<compile_context>
chip_gen: v7x
topology: tpu7x:2x2x1
jax: 0.10.0
libtpu: 0.0.40
codegen_flags: <defaults>
</compile_context>

<pallas_src>
import numpy as np
import jax
import jax.numpy as jnp
from jax import lax
from jax.experimental import pallas as pl
from jax.experimental.pallas import tpu as pltpu


KERNEL_SIZES = (127, 63, 31)
PL_PAD = 64      # left zero pad in combined-tap coordinates (>= max(K)//2 = 63)
KP = 128         # combined tap count: output t reads padded coords [t, t + KP)
BLK = 128        # lane width of one pooled-signal block in the scratch


# ------------------------------ fused kernel -------------------------------- #

def fused_temporal_conv_kernel(x_ref, w_ref, b_ref, o_ref, xpb_ref, x2_ref):
    """One (batch, time-tile) grid step of the fused TemporalConv forward.

    x_ref   : (1, C, F, T)       full-T input block of one batch element
    w_ref   : (O_pad, KP*C)      combined weight, col = tap*C + in_channel
    b_ref   : (O_pad, 1)         combined bias (f32, zero padded)
    o_ref   : (1, O_real, Tt)    this tile's channel-major output block
    xpb_ref : (n_blk, C, BLK)    VMEM: blocked, zero-padded, pooled signal
                                 xpb[b, c, l] = xpad[c, BLK*b + l]
    x2_ref  : (KP*C, Tt)         VMEM: per-tile im2col operand
    """
    C = x_ref.shape[1]
    T = x_ref.shape[3]
    O_real = o_ref.shape[1]
    Tt = o_ref.shape[2]
    cdt = xpb_ref.dtype
    i = pl.program_id(1)

    # ---- Phase 1 (first tile of each batch element): mean over F, scattered
    # into the blocked channel-major scratch.  Padded coordinate q holds
    # original time q - PL_PAD; everything outside [PL_PAD, PL_PAD + T) is 0.
    # Kept per-batch (not per-core) so it stays correct under megacore.
    @pl.when(i == 0)
    def _pool():
        xpb_ref[...] = jnp.zeros(xpb_ref.shape, cdt)

        def pool_chunk(c0, width):                       # static c0 / width
            pc = jnp.mean(
                x_ref[0, :, :, c0:c0 + width].astype(jnp.float32),
                axis=1).astype(cdt)                      # (C, width)
            blk = (PL_PAD + c0) // BLK                   # == c0 // BLK
            n1 = min(BLK - PL_PAD, width)                # lanes landing in blk
            xpb_ref[blk, :, PL_PAD:PL_PAD + n1] = pc[:, 0:n1]
            if width > n1:                               # spill into next block
                xpb_ref[blk + 1, :, 0:width - n1] = pc[:, n1:width]

        for c in range(T // BLK):
            pool_chunk(c * BLK, BLK)
        if T % BLK:
            pool_chunk((T // BLK) * BLK, T % BLK)

    # ---- Phase 2: outputs for absolute times [i*Tt, i*Tt + Tt).
    # Gather the (Tt + KP - 1)-sample window as a small lane-dense value
    # (dynamic index only on the scratch's outer block axis), then build the
    # (KP*C, Tt) im2col operand with *static* lane slices, and contract it
    # against the combined weight in a single deep matmul.
    n_win = (Tt + KP - 1 + BLK - 1) // BLK               # blocks per window
    b0 = i * (Tt // BLK)                                 # Tt % BLK == 0 if nT > 1
    win = jnp.concatenate([xpb_ref[b0 + j] for j in range(n_win)],
                          axis=1)                        # (C, n_win*BLK)

    for k in range(KP):                                  # static shifts
        x2_ref[k * C:(k + 1) * C, :] = win[:, k:k + Tt]

    acc = jnp.dot(w_ref[...], x2_ref[...],
                  preferred_element_type=jnp.float32)    # (O_pad, Tt), f32 acc
    y = acc + b_ref[...]                                 # f32 bias broadcast
    o_ref[0] = y[0:O_real, :].astype(o_ref.dtype)        # lane-dense store


# ------------------------------ wrapper -------------------------------------- #

def _combine_params(params, C, compute_dtype):
    """Fold the three 'same'-padded Conv1d weights into one (O_pad, KP*C) matrix."""
    rows, biases = [], []
    for (w, b) in params:
        O_i, C_i, K_i = w.shape
        assert C_i == C
        pad_i = K_i // 2
        left = PL_PAD - pad_i                            # tap j -> k = j + left
        wk = jnp.transpose(w, (0, 2, 1))                 # (O_i, K_i, C)
        wk = jnp.pad(wk, ((0, 0), (left, KP - K_i - left), (0, 0)))
        rows.append(wk.reshape(O_i, KP * C))             # col = k*C + c
        biases.append(b)
    wc = jnp.concatenate(rows, axis=0)                   # (O_real, KP*C)
    o_real = wc.shape[0]
    o_pad = ((o_real + 7) // 8) * 8                      # sublane aligned (42->48)
    wc = jnp.pad(wc, ((0, o_pad - o_real), (0, 0))).astype(compute_dtype)
    bc = jnp.pad(jnp.concatenate(biases), (0, o_pad - o_real))
    bc = bc.reshape(o_pad, 1).astype(jnp.float32)
    return wc, bc, o_real, o_pad


def temporal_conv_forward(params, x, *, compute_dtype=jnp.bfloat16, tile_t=512):
    """x: [B, C, F, T] -> [B, outs*(1+4+9), T] in a single fused Pallas kernel.

    compute_dtype: bfloat16 (default, best on v6e/v7x) or float32 (v5e / max
    accuracy).  Accumulation and bias are always float32.
    """
    B, C, F, T = x.shape
    wc, bc, o_real, o_pad = _combine_params(params, C, compute_dtype)

    if T <= tile_t:
        tt, n_t = T, 1
    else:
        assert tile_t % BLK == 0, "tile_t must be a multiple of 128"
        tt, n_t = tile_t, pl.cdiv(T, tile_t)
    n_blk = (n_t * tt + KP - 1 + BLK - 1) // BLK + 1     # pooled-signal blocks

    # Explicit VMEM budget derived from the actual block / scratch sizes
    # (double-buffered pipeline blocks + persistent scratch) plus headroom.
    csize = jnp.dtype(compute_dtype).itemsize
    xsize = x.dtype.itemsize
    needed = (2 * C * F * T * xsize                      # resident input block
              + 2 * o_real * max(tt, BLK) * xsize        # output tile block
              + 2 * (o_pad * KP * C * csize + o_pad * BLK * 4)   # weight + bias
              + n_blk * 8 * BLK * csize                  # pooled scratch
              + KP * C * max(tt, BLK) * csize)           # im2col scratch
    vmem_limit = int(min(96 * 2**20, max(32 * 2**20, needed + (8 << 20))))

    return pl.pallas_call(
        fused_temporal_conv_kernel,
        out_shape=jax.ShapeDtypeStruct((B, o_real, T), x.dtype),
        grid=(B, n_t),
        in_specs=[
            # Full-T input block; constant along the tile axis -> stays resident.
            pl.BlockSpec((1, C, F, T), lambda b, i: (b, 0, 0, 0)),
            pl.BlockSpec((o_pad, KP * C), lambda b, i: (0, 0)),
            pl.BlockSpec((o_pad, 1), lambda b, i: (0, 0)),
        ],
        out_specs=pl.BlockSpec((1, o_real, tt), lambda b, i: (b, 0, i)),
        scratch_shapes=[
            pltpu.VMEM((n_blk, C, BLK), compute_dtype),  # pooled, padded signal
            pltpu.VMEM((KP * C, tt), compute_dtype),     # per-tile im2col
        ],
        compiler_params=pltpu.CompilerParams(
            dimension_semantics=("parallel", "arbitrary"),
            vmem_limit_bytes=vmem_limit),
    )(x, wc, bc)


# ------------------------------ init & reference ----------------------------- #

def init_temporal_conv(key, ins, outs):
    """Deterministic init matching Conv1d parameter shapes (uniform(+-1/sqrt(fan_in)))."""
    params = []
    for i, k in enumerate(KERNEL_SIZES, start=1):
        key, wkey, bkey = jax.random.split(key, 3)
        o = outs * i ** 2
        bound = 1.0 / np.sqrt(ins * k)
        w = jax.random.uniform(wkey, (o, ins, k), jnp.float32, -bound, bound)
        b = jax.random.uniform(bkey, (o,), jnp.float32, -bound, bound)
        params.append((w, b))
    return params


def reference_forward(params, x):
    xm = jnp.mean(x, axis=2)                             # [B, C, T]
    ys = []
    for (w, b) in params:
        k = w.shape[2]
        pad = k // 2
        y = lax.conv_general_dilated(
            xm, w, window_strides=(1,), padding=[(pad, pad)],
            dimension_numbers=("NCH", "OIH", "NCH"))
        ys.append(y + b[None, :, None])
    return jnp.concatenate(ys, axis=1)


if __name__ == "__main__":
    B, ins, F = 2, 4, 16
    outs = 3
    O_total = outs * (1 + 4 + 9)

    key = jax.random.PRNGKey(0)
    key, xkey, pkey, x2key = jax.random.split(key, 4)
    params = init_temporal_conv(pkey, ins, outs)

    # --- small single-tile case -------------------------------------------- #
    T = 16
    x = jax.random.normal(xkey, (B, ins, F, T), jnp.float32)
    y_ref = jax.block_until_ready(reference_forward(params, x))

    y_f32 = jax.block_until_ready(
        temporal_conv_forward(params, x, compute_dtype=jnp.float32))
    assert y_f32.shape == (B, O_total, T), y_f32.shape
    np.testing.assert_allclose(np.asarray(y_f32), np.asarray(y_ref),
                               rtol=1e-4, atol=1e-4)

    y_bf16 = jax.block_until_ready(temporal_conv_forward(params, x))  # bf16 default
    np.testing.assert_allclose(np.asarray(y_bf16), np.asarray(y_ref),
                               rtol=2e-2, atol=2e-2)

    # --- multi-tile case (exercises the tiled path + partial last tile) ----- #
    T2 = 600
    x2 = jax.random.normal(x2key, (B, ins, F, T2), jnp.float32)
    y2_ref = jax.block_until_ready(reference_forward(params, x2))

    y2_f32 = jax.block_until_ready(
        temporal_conv_forward(params, x2, compute_dtype=jnp.float32))
    assert y2_f32.shape == (B, O_total, T2), y2_f32.shape
    np.testing.assert_allclose(np.asarray(y2_f32), np.asarray(y2_ref),
                               rtol=1e-4, atol=1e-4)

    y2_bf16 = jax.block_until_ready(temporal_conv_forward(params, x2))
    np.testing.assert_allclose(np.asarray(y2_bf16), np.asarray(y2_ref),
                               rtol=2e-2, atol=2e-2)

    print("KERNEL_OK")
</pallas_src>

<mosaic_0001>
module attributes {stable_mosaic.version = 11 : i64} {
  func.func @fused_temporal_conv_kernel(%arg0: i32, %arg1: i32, %arg2: memref<1x4x16x16xf32, #tpu.memory_space<vmem>>, %arg3: memref<48x512xf32, #tpu.memory_space<vmem>>, %arg4: memref<48x1xf32, #tpu.memory_space<vmem>>, %arg5: memref<1x42x16xf32, #tpu.memory_space<vmem>>, %arg6: memref<3x4x128xf32, #tpu.memory_space<vmem>>, %arg7: memref<512x16xf32, #tpu.memory_space<vmem>>) attributes {dimension_semantics = [#tpu.dimension_semantics<parallel>, #tpu.dimension_semantics<arbitrary>], iteration_bounds = array<i64: 2, 1>, scalar_prefetch = 0 : i64, scratch_operands = 2 : i64, tpu.core_type = #tpu.core_type<tc>, window_params = [{transform_indices = @transform_0, window_bounds = array<i64: 1, 4, 16, 16>}, {pipeline_mode = #tpu.pipeline_mode<synchronous>, transform_indices = @transform_1, window_bounds = array<i64: 48, 512>}, {pipeline_mode = #tpu.pipeline_mode<synchronous>, transform_indices = @transform_2, window_bounds = array<i64: 48, 1>}, {transform_indices = @transform_3, window_bounds = array<i64: 1, 42, 16>}]} {
    %c0_i32 = arith.constant 0 : i32
    %0 = arith.cmpi eq, %arg1, %c0_i32 : i32
    %1 = arith.extui %0 : i1 to i32
    %c0_i32_0 = arith.constant 0 : i32
    %2 = arith.cmpi ne, %1, %c0_i32_0 : i32
    scf.if %2 {
      %cst_144 = arith.constant 0.000000e+00 : f32
      %279 = vector.broadcast %cst_144 : f32 to vector<3x4x128xf32>
      %c0_145 = arith.constant 0 : index
      %c0_146 = arith.constant 0 : index
      %c0_147 = arith.constant 0 : index
      %280 = vector.load %arg6[%c0_145, %c0_146, %c0_147] : memref<3x4x128xf32, #tpu.memory_space<vmem>>, vector<3x4x128xf32>
      tpu.vector_store %arg6[%c0_145, %c0_146, %c0_147], %279 {strides = array<i32>} : memref<3x4x128xf32, #tpu.memory_space<vmem>>, vector<3x4x128xf32>,
      %c0_148 = arith.constant 0 : index
      %c0_149 = arith.constant 0 : index
      %c0_150 = arith.constant 0 : index
      %c0_151 = arith.constant 0 : index
      %281 = vector.load %arg2[%c0_148, %c0_149, %c0_150, %c0_151] : memref<1x4x16x16xf32, #tpu.memory_space<vmem>>, vector<1x4x16x16xf32>
      %282 = vector.shape_cast %281 : vector<1x4x16x16xf32> to vector<4x16x16xf32>
      %cst_152 = arith.constant dense<0.000000e+00> : vector<4x16xf32>
      %283 = vector.multi_reduction <add>, %282, %cst_152 [1] : vector<4x16x16xf32> to vector<4x16xf32>
      %cst_153 = arith.constant 1.600000e+01 : f32
      %284 = vector.broadcast %cst_153 : f32 to vector<4x16xf32>
      %285 = arith.divf %283, %284 : vector<4x16xf32>
      %c0_154 = arith.constant 0 : index
      %c0_155 = arith.constant 0 : index
      %c64_156 = arith.constant 64 : index
      %286 = vector.load %arg6[%c0_154, %c0_155, %c64_156] : memref<3x4x128xf32, #tpu.memory_space<vmem>>, vector<1x4x16xf32>
      %287 = vector.shape_cast %286 : vector<1x4x16xf32> to vector<4x16xf32>
      %288 = vector.shape_cast %285 : vector<4x16xf32> to vector<1x4x16xf32>
      tpu.vector_store %arg6[%c0_154, %c0_155, %c64_156], %288 {strides = array<i32>} : memref<3x4x128xf32, #tpu.memory_space<vmem>>, vector<1x4x16xf32>,
    } else {
    }
    %c0_i32_1 = arith.constant 0 : i32
    %3 = arith.muli %arg1, %c0_i32_1 : i32
    %c0_i32_2 = arith.constant 0 : i32
    %4 = arith.addi %3, %c0_i32_2 : i32
    %5 = arith.index_cast %4 : i32 to index
    %c0 = arith.constant 0 : index
    %c0_3 = arith.constant 0 : index
    %6 = vector.load %arg6[%5, %c0, %c0_3] : memref<3x4x128xf32, #tpu.memory_space<vmem>>, vector<1x4x128xf32>
    %7 = vector.shape_cast %6 : vector<1x4x128xf32> to vector<4x128xf32>
    %c1_i32 = arith.constant 1 : i32
    %8 = arith.addi %3, %c1_i32 : i32
    %9 = arith.index_cast %8 : i32 to index
    %c0_4 = arith.constant 0 : index
    %c0_5 = arith.constant 0 : index
    %10 = vector.load %arg6[%9, %c0_4, %c0_5] : memref<3x4x128xf32, #tpu.memory_space<vmem>>, vector<1x4x128xf32>
    %11 = vector.shape_cast %10 : vector<1x4x128xf32> to vector<4x128xf32>
    %12 = tpu.concatenate %7, %11 in 1 : vector<4x128xf32>, vector<4x128xf32> -> vector<4x256xf32>
    %13 = vector.extract_strided_slice %12 {offsets = [0, 0], sizes = [4, 16], strides = [1, 1]} : vector<4x256xf32> to vector<4x16xf32>
    %c0_6 = arith.constant 0 : index
    %c0_7 = arith.constant 0 : index
    %14 = vector.load %arg7[%c0_6, %c0_7] : memref<512x16xf32, #tpu.memory_space<vmem>>, vector<4x16xf32>
    tpu.vector_store %arg7[%c0_6, %c0_7], %13 {strides = array<i32>} : memref<512x16xf32, #tpu.memory_space<vmem>>, vector<4x16xf32>,
    %15 = vector.extract_strided_slice %12 {offsets = [0, 1], sizes = [4, 16], strides = [1, 1]} : vector<4x256xf32> to vector<4x16xf32>
    %c4 = arith.constant 4 : index
    %c0_8 = arith.constant 0 : index
    %16 = vector.load %arg7[%c4, %c0_8] : memref<512x16xf32, #tpu.memory_space<vmem>>, vector<4x16xf32>
    tpu.vector_store %arg7[%c4, %c0_8], %15 {strides = array<i32>} : memref<512x16xf32, #tpu.memory_space<vmem>>, vector<4x16xf32>,
    %17 = vector.extract_strided_slice %12 {offsets = [0, 2], sizes = [4, 16], strides = [1, 1]} : vector<4x256xf32> to vector<4x16xf32>
    %c8 = arith.constant 8 : index
    %c0_9 = arith.constant 0 : index
    %18 = vector.load %arg7[%c8, %c0_9] : memref<512x16xf32, #tpu.memory_space<vmem>>, vector<4x16xf32>
    tpu.vector_store %arg7[%c8, %c0_9], %17 {strides = array<i32>} : memref<512x16xf32, #tpu.memory_space<vmem>>, vector<4x16xf32>,
    %19 = vector.extract_strided_slice %12 {offsets = [0, 3], sizes = [4, 16], strides = [1, 1]} : vector<4x256xf32> to vector<4x16xf32>
    %c12 = arith.constant 12 : index
    %c0_10 = arith.constant 0 : index
    %20 = vector.load %arg7[%c12, %c0_10] : memref<512x16xf32, #tpu.memory_space<vmem>>, vector<4x16xf32>
    tpu.vector_store %arg7[%c12, %c0_10], %19 {strides = array<i32>} : memref<512x16xf32, #tpu.memory_space<vmem>>, vector<4x16xf32>,
    %21 = vector.extract_strided_slice %12 {offsets = [0, 4], sizes = [4, 16], strides = [1, 1]} : vector<4x256xf32> to vector<4x16xf32>
    %c16 = arith.constant 16 : index
    %c0_11 = arith.constant 0 : index
    %22 = vector.load %arg7[%c16, %c0_11] : memref<512x16xf32, #tpu.memory_space<vmem>>, vector<4x16xf32>
    tpu.vector_store %arg7[%c16, %c0_11], %21 {strides = array<i32>} : memref<512x16xf32, #tpu.memory_space<vmem>>, vector<4x16xf32>,
    %23 = vector.extract_strided_slice %12 {offsets = [0, 5], sizes = [4, 16], strides = [1, 1]} : vector<4x256xf32> to vector<4x16xf32>
    %c20 = arith.constant 20 : index
    %c0_12 = arith.constant 0 : index
    %24 = vector.load %arg7[%c20, %c0_12] : memref<512x16xf32, #tpu.memory_space<vmem>>, vector<4x16xf32>
    tpu.vector_store %arg7[%c20, %c0_12], %23 {strides = array<i32>} : memref<512x16xf32, #tpu.memory_space<vmem>>, vector<4x16xf32>,
    %25 = vector.extract_strided_slice %12 {offsets = [0, 6], sizes = [4, 16], strides = [1, 1]} : vector<4x256xf32> to vector<4x16xf32>
    %c24 = arith.constant 24 : index
    %c0_13 = arith.constant 0 : index
    %26 = vector.load %arg7[%c24, %c0_13] : memref<512x16xf32, #tpu.memory_space<vmem>>, vector<4x16xf32>
    tpu.vector_store %arg7[%c24, %c0_13], %25 {strides = array<i32>} : memref<512x16xf32, #tpu.memory_space<vmem>>, vector<4x16xf32>,
    %27 = vector.extract_strided_slice %12 {offsets = [0, 7], sizes = [4, 16], strides = [1, 1]} : vector<4x256xf32> to vector<4x16xf32>
    %c28 = arith.constant 28 : index
    %c0_14 = arith.constant 0 : index
    %28 = vector.load %arg7[%c28, %c0_14] : memref<512x16xf32, #tpu.memory_space<vmem>>, vector<4x16xf32>
    tpu.vector_store %arg7[%c28, %c0_14], %27 {strides = array<i32>} : memref<512x16xf32, #tpu.memory_space<vmem>>, vector<4x16xf32>,
    %29 = vector.extract_strided_slice %12 {offsets = [0, 8], sizes = [4, 16], strides = [1, 1]} : vector<4x256xf32> to vector<4x16xf32>
    %c32 = arith.constant 32 : index
    %c0_15 = arith.constant 0 : index
    %30 = vector.load %arg7[%c32, %c0_15] : memref<512x16xf32, #tpu.memory_space<vmem>>, vector<4x16xf32>
    tpu.vector_store %arg7[%c32, %c0_15], %29 {strides = array<i32>} : memref<512x16xf32, #tpu.memory_space<vmem>>, vector<4x16xf32>,
    %31 = vector.extract_strided_slice %12 {offsets = [0, 9], sizes = [4, 16], strides = [1, 1]} : vector<4x256xf32> to vector<4x16xf32>
    %c36 = arith.constant 36 : index
    %c0_16 = arith.constant 0 : index
    %32 = vector.load %arg7[%c36, %c0_16] : memref<512x16xf32, #tpu.memory_space<vmem>>, vector<4x16xf32>
    tpu.vector_store %arg7[%c36, %c0_16], %31 {strides = array<i32>} : memref<512x16xf32, #tpu.memory_space<vmem>>, vector<4x16xf32>,
    %33 = vector.extract_strided_slice %12 {offsets = [0, 10], sizes = [4, 16], strides = [1, 1]} : vector<4x256xf32> to vector<4x16xf32>
    %c40 = arith.constant 40 : index
    %c0_17 = arith.constant 0 : index
    %34 = vector.load %arg7[%c40, %c0_17] : memref<512x16xf32, #tpu.memory_space<vmem>>, vector<4x16xf32>
    tpu.vector_store %arg7[%c40, %c0_17], %33 {strides = array<i32>} : memref<512x16xf32, #tpu.memory_space<vmem>>, vector<4x16xf32>,
    %35 = vector.extract_strided_slice %12 {offsets = [0, 11], sizes = [4, 16], strides = [1, 1]} : vector<4x256xf32> to vector<4x16xf32>
    %c44 = arith.constant 44 : index
    %c0_18 = arith.constant 0 : index
    %36 = vector.load %arg7[%c44, %c0_18] : memref<512x16xf32, #tpu.memory_space<vmem>>, vector<4x16xf32>
    tpu.vector_store %arg7[%c44, %c0_18], %35 {strides = array<i32>} : memref<512x16xf32, #tpu.memory_space<vmem>>, vector<4x16xf32>,
    %37 = vector.extract_strided_slice %12 {offsets = [0, 12], sizes = [4, 16], strides = [1, 1]} : vector<4x256xf32> to vector<4x16xf32>
    %c48 = arith.constant 48 : index
    %c0_19 = arith.constant 0 : index
    %38 = vector.load %arg7[%c48, %c0_19] : memref<512x16xf32, #tpu.memory_space<vmem>>, vector<4x16xf32>
    tpu.vector_store %arg7[%c48, %c0_19], %37 {strides = array<i32>} : memref<512x16xf32, #tpu.memory_space<vmem>>, vector<4x16xf32>,
    %39 = vector.extract_strided_slice %12 {offsets = [0, 13], sizes = [4, 16], strides = [1, 1]} : vector<4x256xf32> to vector<4x16xf32>
    %c52 = arith.constant 52 : index
    %c0_20 = arith.constant 0 : index
    %40 = vector.load %arg7[%c52, %c0_20] : memref<512x16xf32, #tpu.memory_space<vmem>>, vector<4x16xf32>
    tpu.vector_store %arg7[%c52, %c0_20], %39 {strides = array<i32>} : memref<512x16xf32, #tpu.memory_space<vmem>>, vector<4x16xf32>,
    %41 = vector.extract_strided_slice %12 {offsets = [0, 14], sizes = [4, 16], strides = [1, 1]} : vector<4x256xf32> to vector<4x16xf32>
    %c56 = arith.constant 56 : index
    %c0_21 = arith.constant 0 : index
    %42 = vector.load %arg7[%c56, %c0_21] : memref<512x16xf32, #tpu.memory_space<vmem>>, vector<4x16xf32>
    tpu.vector_store %arg7[%c56, %c0_21], %41 {strides = array<i32>} : memref<512x16xf32, #tpu.memory_space<vmem>>, vector<4x16xf32>,
    %43 = vector.extract_strided_slice %12 {offsets = [0, 15], sizes = [4, 16], strides = [1, 1]} : vector<4x256xf32> to vector<4x16xf32>
    %c60 = arith.constant 60 : index
    %c0_22 = arith.constant 0 : index
    %44 = vector.load %arg7[%c60, %c0_22] : memref<512x16xf32, #tpu.memory_space<vmem>>, vector<4x16xf32>
    tpu.vector_store %arg7[%c60, %c0_22], %43 {strides = array<i32>} : memref<512x16xf32, #tpu.memory_space<vmem>>, vector<4x16xf32>,
    %45 = vector.extract_strided_slice %12 {offsets = [0, 16], sizes = [4, 16], strides = [1, 1]} : vector<4x256xf32> to vector<4x16xf32>
    %c64 = arith.constant 64 : index
    %c0_23 = arith.constant 0 : index
    %46 = vector.load %arg7[%c64, %c0_23] : memref<512x16xf32, #tpu.memory_space<vmem>>, vector<4x16xf32>
    tpu.vector_store %arg7[%c64, %c0_23], %45 {strides = array<i32>} : memref<512x16xf32, #tpu.memory_space<vmem>>, vector<4x16xf32>,
    %47 = vector.extract_strided_slice %12 {offsets = [0, 17], sizes = [4, 16], strides = [1, 1]} : vector<4x256xf32> to vector<4x16xf32>
    %c68 = arith.constant 68 : index
    %c0_24 = arith.constant 0 : index
    %48 = vector.load %arg7[%c68, %c0_24] : memref<512x16xf32, #tpu.memory_space<vmem>>, vector<4x16xf32>
    tpu.vector_store %arg7[%c68, %c0_24], %47 {strides = array<i32>} : memref<512x16xf32, #tpu.memory_space<vmem>>, vector<4x16xf32>,
    %49 = vector.extract_strided_slice %12 {offsets = [0, 18], sizes = [4, 16], strides = [1, 1]} : vector<4x256xf32> to vector<4x16xf32>
    %c72 = arith.constant 72 : index
    %c0_25 = arith.constant 0 : index
    %50 = vector.load %arg7[%c72, %c0_25] : memref<512x16xf32, #tpu.memory_space<vmem>>, vector<4x16xf32>
    tpu.vector_store %arg7[%c72, %c0_25], %49 {strides = array<i32>} : memref<512x16xf32, #tpu.memory_space<vmem>>, vector<4x16xf32>,
    %51 = vector.extract_strided_slice %12 {offsets = [0, 19], sizes = [4, 16], strides = [1, 1]} : vector<4x256xf32> to vector<4x16xf32>
    %c76 = arith.constant 76 : index
    %c0_26 = arith.constant 0 : index
    %52 = vector.load %arg7[%c76, %c0_26] : memref<512x16xf32, #tpu.memory_space<vmem>>, vector<4x16xf32>
    tpu.vector_store %arg7[%c76, %c0_26], %51 {strides = array<i32>} : memref<512x16xf32, #tpu.memory_space<vmem>>, vector<4x16xf32>,
    %53 = vector.extract_strided_slice %12 {offsets = [0, 20], sizes = [4, 16], strides = [1, 1]} : vector<4x256xf32> to vector<4x16xf32>
    %c80 = arith.constant 80 : index
    %c0_27 = arith.constant 0 : index
    %54 = vector.load %arg7[%c80, %c0_27] : memref<512x16xf32, #tpu.memory_space<vmem>>, vector<4x16xf32>
    tpu.vector_store %arg7[%c80, %c0_27], %53 {strides = array<i32>} : memref<512x16xf32, #tpu.memory_space<vmem>>, vector<4x16xf32>,
    %55 = vector.extract_strided_slice %12 {offsets = [0, 21], sizes = [4, 16], strides = [1, 1]} : vector<4x256xf32> to vector<4x16xf32>
    %c84 = arith.constant 84 : index
    %c0_28 = arith.constant 0 : index
    %56 = vector.load %arg7[%c84, %c0_28] : memref<512x16xf32, #tpu.memory_space<vmem>>, vector<4x16xf32>
    tpu.vector_store %arg7[%c84, %c0_28], %55 {strides = array<i32>} : memref<512x16xf32, #tpu.memory_space<vmem>>, vector<4x16xf32>,
    %57 = vector.extract_strided_slice %12 {offsets = [0, 22], sizes = [4, 16], strides = [1, 1]} : vector<4x256xf32> to vector<4x16xf32>
    %c88 = arith.constant 88 : index
    %c0_29 = arith.constant 0 : index
    %58 = vector.load %arg7[%c88, %c0_29] : memref<512x16xf32, #tpu.memory_space<vmem>>, vector<4x16xf32>
    tpu.vector_store %arg7[%c88, %c0_29], %57 {strides = array<i32>} : memref<512x16xf32, #tpu.memory_space<vmem>>, vector<4x16xf32>,
    %59 = vector.extract_strided_slice %12 {offsets = [0, 23], sizes = [4, 16], strides = [1, 1]} : vector<4x256xf32> to vector<4x16xf32>
    %c92 = arith.constant 92 : index
    %c0_30 = arith.constant 0 : index
    %60 = vector.load %arg7[%c92, %c0_30] : memref<512x16xf32, #tpu.memory_space<vmem>>, vector<4x16xf32>
    tpu.vector_store %arg7[%c92, %c0_30], %59 {strides = array<i32>} : memref<512x16xf32, #tpu.memory_space<vmem>>, vector<4x16xf32>,
    %61 = vector.extract_strided_slice %12 {offsets = [0, 24], sizes = [4, 16], strides = [1, 1]} : vector<4x256xf32> to vector<4x16xf32>
    %c96 = arith.constant 96 : index
    %c0_31 = arith.constant 0 : index
    %62 = vector.load %arg7[%c96, %c0_31] : memref<512x16xf32, #tpu.memory_space<vmem>>, vector<4x16xf32>
    tpu.vector_store %arg7[%c96, %c0_31], %61 {strides = array<i32>} : memref<512x16xf32, #tpu.memory_space<vmem>>, vector<4x16xf32>,
    %63 = vector.extract_strided_slice %12 {offsets = [0, 25], sizes = [4, 16], strides = [1, 1]} : vector<4x256xf32> to vector<4x16xf32>
    %c100 = arith.constant 100 : index
    %c0_32 = arith.constant 0 : index
    %64 = vector.load %arg7[%c100, %c0_32] : memref<512x16xf32, #tpu.memory_space<vmem>>, vector<4x16xf32>
    tpu.vector_store %arg7[%c100, %c0_32], %63 {strides = array<i32>} : memref<512x16xf32, #tpu.memory_space<vmem>>, vector<4x16xf32>,
    %65 = vector.extract_strided_slice %12 {offsets = [0, 26], sizes = [4, 16], strides = [1, 1]} : vector<4x256xf32> to vector<4x16xf32>
    %c104 = arith.constant 104 : index
    %c0_33 = arith.constant 0 : index
    %66 = vector.load %arg7[%c104, %c0_33] : memref<512x16xf32, #tpu.memory_space<vmem>>, vector<4x16xf32>
    tpu.vector_store %arg7[%c104, %c0_33], %65 {strides = array<i32>} : memref<512x16xf32, #tpu.memory_space<vmem>>, vector<4x16xf32>,
    %67 = vector.extract_strided_slice %12 {offsets = [0, 27], sizes = [4, 16], strides = [1, 1]} : vector<4x256xf32> to vector<4x16xf32>
    %c108 = arith.constant 108 : index
    %c0_34 = arith.constant 0 : index
    %68 = vector.load %arg7[%c108, %c0_34] : memref<512x16xf32, #tpu.memory_space<vmem>>, vector<4x16xf32>
    tpu.vector_store %arg7[%c108, %c0_34], %67 {strides = array<i32>} : memref<512x16xf32, #tpu.memory_space<vmem>>, vector<4x16xf32>,
    %69 = vector.extract_strided_slice %12 {offsets = [0, 28], sizes = [4, 16], strides = [1, 1]} : vector<4x256xf32> to vector<4x16xf32>
    %c112 = arith.constant 112 : index
    %c0_35 = arith.constant 0 : index
    %70 = vector.load %arg7[%c112, %c0_35] : memref<512x16xf32, #tpu.memory_space<vmem>>, vector<4x16xf32>
    tpu.vector_store %arg7[%c112, %c0_35], %69 {strides = array<i32>} : memref<512x16xf32, #tpu.memory_space<vmem>>, vector<4x16xf32>,
    %71 = vector.extract_strided_slice %12 {offsets = [0, 29], sizes = [4, 16], strides = [1, 1]} : vector<4x256xf32> to vector<4x16xf32>
    %c116 = arith.constant 116 : index
    %c0_36 = arith.constant 0 : index
    %72 = vector.load %arg7[%c116, %c0_36] : memref<512x16xf32, #tpu.memory_space<vmem>>, vector<4x16xf32>
    tpu.vector_store %arg7[%c116, %c0_36], %71 {strides = array<i32>} : memref<512x16xf32, #tpu.memory_space<vmem>>, vector<4x16xf32>,
    %73 = vector.extract_strided_slice %12 {offsets = [0, 30], sizes = [4, 16], strides = [1, 1]} : vector<4x256xf32> to vector<4x16xf32>
    %c120 = arith.constant 120 : index
    %c0_37 = arith.constant 0 : index
    %74 = vector.load %arg7[%c120, %c0_37] : memref<512x16xf32, #tpu.memory_space<vmem>>, vector<4x16xf32>
    tpu.vector_store %arg7[%c120, %c0_37], %73 {strides = array<i32>} : memref<512x16xf32, #tpu.memory_space<vmem>>, vector<4x16xf32>,
    %75 = vector.extract_strided_slice %12 {offsets = [0, 31], sizes = [4, 16], strides = [1, 1]} : vector<4x256xf32> to vector<4x16xf32>
    %c124 = arith.constant 124 : index
    %c0_38 = arith.constant 0 : index
    %76 = vector.load %arg7[%c124, %c0_38] : memref<512x16xf32, #tpu.memory_space<vmem>>, vector<4x16xf32>
    tpu.vector_store %arg7[%c124, %c0_38], %75 {strides = array<i32>} : memref<512x16xf32, #tpu.memory_space<vmem>>, vector<4x16xf32>,
    %77 = vector.extract_strided_slice %12 {offsets = [0, 32], sizes = [4, 16], strides = [1, 1]} : vector<4x256xf32> to vector<4x16xf32>
    %c128 = arith.constant 128 : index
    %c0_39 = arith.constant 0 : index
    %78 = vector.load %arg7[%c128, %c0_39] : memref<512x16xf32, #tpu.memory_space<vmem>>, vector<4x16xf32>
    tpu.vector_store %arg7[%c128, %c0_39], %77 {strides = array<i32>} : memref<512x16xf32, #tpu.memory_space<vmem>>, vector<4x16xf32>,
    %79 = vector.extract_strided_slice %12 {offsets = [0, 33], sizes = [4, 16], strides = [1, 1]} : vector<4x256xf32> to vector<4x16xf32>
    %c132 = arith.constant 132 : index
    %c0_40 = arith.constant 0 : index
    %80 = vector.load %arg7[%c132, %c0_40] : memref<512x16xf32, #tpu.memory_space<vmem>>, vector<4x16xf32>
    tpu.vector_store %arg7[%c132, %c0_40], %79 {strides = array<i32>} : memref<512x16xf32, #tpu.memory_space<vmem>>, vector<4x16xf32>,
    %81 = vector.extract_strided_slice %12 {offsets = [0, 34], sizes = [4, 16], strides = [1, 1]} : vector<4x256xf32> to vector<4x16xf32>
    %c136 = arith.constant 136 : index
    %c0_41 = arith.constant 0 : index
    %82 = vector.load %arg7[%c136, %c0_41] : memref<512x16xf32, #tpu.memory_space<vmem>>, vector<4x16xf32>
    tpu.vector_store %arg7[%c136, %c0_41], %81 {strides = array<i32>} : memref<512x16xf32, #tpu.memory_space<vmem>>, vector<4x16xf32>,
    %83 = vector.extract_strided_slice %12 {offsets = [0, 35], sizes = [4, 16], strides = [1, 1]} : vector<4x256xf32> to vector<4x16xf32>
    %c140 = arith.constant 140 : index
    %c0_42 = arith.constant 0 : index
    %84 = vector.load %arg7[%c140, %c0_42] : memref<512x16xf32, #tpu.memory_space<vmem>>, vector<4x16xf32>
    tpu.vector_store %arg7[%c140, %c0_42], %83 {strides = array<i32>} : memref<512x16xf32, #tpu.memory_space<vmem>>, vector<4x16xf32>,
    %85 = vector.extract_strided_slice %12 {offsets = [0, 36], sizes = [4, 16], strides = [1, 1]} : vector<4x256xf32> to vector<4x16xf32>
    %c144 = arith.constant 144 : index
    %c0_43 = arith.constant 0 : index
    %86 = vector.load %arg7[%c144, %c0_43] : memref<512x16xf32, #tpu.memory_space<vmem>>, vector<4x16xf32>
    tpu.vector_store %arg7[%c144, %c0_43], %85 {strides = array<i32>} : memref<512x16xf32, #tpu.memory_space<vmem>>, vector<4x16xf32>,
    %87 = vector.extract_strided_slice %12 {offsets = [0, 37], sizes = [4, 16], strides = [1, 1]} : vector<4x256xf32> to vector<4x16xf32>
    %c148 = arith.constant 148 : index
    %c0_44 = arith.constant 0 : index
    %88 = vector.load %arg7[%c148, %c0_44] : memref<512x16xf32, #tpu.memory_space<vmem>>, vector<4x16xf32>
    tpu.vector_store %arg7[%c148, %c0_44], %87 {strides = array<i32>} : memref<512x16xf32, #tpu.memory_space<vmem>>, vector<4x16xf32>,
    %89 = vector.extract_strided_slice %12 {offsets = [0, 38], sizes = [4, 16], strides = [1, 1]} : vector<4x256xf32> to vector<4x16xf32>
    %c152 = arith.constant 152 : index
    %c0_45 = arith.constant 0 : index
    %90 = vector.load %arg7[%c152, %c0_45] : memref<512x16xf32, #tpu.memory_space<vmem>>, vector<4x16xf32>
    tpu.vector_store %arg7[%c152, %c0_45], %89 {strides = array<i32>} : memref<512x16xf32, #tpu.memory_space<vmem>>, vector<4x16xf32>,
    %91 = vector.extract_strided_slice %12 {offsets = [0, 39], sizes = [4, 16], strides = [1, 1]} : vector<4x256xf32> to vector<4x16xf32>
    %c156 = arith.constant 156 : index
    %c0_46 = arith.constant 0 : index
    %92 = vector.load %arg7[%c156, %c0_46] : memref<512x16xf32, #tpu.memory_space<vmem>>, vector<4x16xf32>
    tpu.vector_store %arg7[%c156, %c0_46], %91 {strides = array<i32>} : memref<512x16xf32, #tpu.memory_space<vmem>>, vector<4x16xf32>,
    %93 = vector.extract_strided_slice %12 {offsets = [0, 40], sizes = [4, 16], strides = [1, 1]} : vector<4x256xf32> to vector<4x16xf32>
    %c160 = arith.constant 160 : index
    %c0_47 = arith.constant 0 : index
    %94 = vector.load %arg7[%c160, %c0_47] : memref<512x16xf32, #tpu.memory_space<vmem>>, vector<4x16xf32>
    tpu.vector_store %arg7[%c160, %c0_47], %93 {strides = array<i32>} : memref<512x16xf32, #tpu.memory_space<vmem>>, vector<4x16xf32>,
    %95 = vector.extract_strided_slice %12 {offsets = [0, 41], sizes = [4, 16], strides = [1, 1]} : vector<4x256xf32> to vector<4x16xf32>
    %c164 = arith.constant 164 : index
    %c0_48 = arith.constant 0 : index
    %96 = vector.load %arg7[%c164, %c0_48] : memref<512x16xf32, #tpu.memory_space<vmem>>, vector<4x16xf32>
    tpu.vector_store %arg7[%c164, %c0_48], %95 {strides = array<i32>} : memref<512x16xf32, #tpu.memory_space<vmem>>, vector<4x16xf32>,
    %97 = vector.extract_strided_slice %12 {offsets = [0, 42], sizes = [4, 16], strides = [1, 1]} : vector<4x256xf32> to vector<4x16xf32>
    %c168 = arith.constant 168 : index
    %c0_49 = arith.constant 0 : index
    %98 = vector.load %arg7[%c168, %c0_49] : memref<512x16xf32, #tpu.memory_space<vmem>>, vector<4x16xf32>
    tpu.vector_store %arg7[%c168, %c0_49], %97 {strides = array<i32>} : memref<512x16xf32, #tpu.memory_space<vmem>>, vector<4x16xf32>,
    %99 = vector.extract_strided_slice %12 {offsets = [0, 43], sizes = [4, 16], strides = [1, 1]} : vector<4x256xf32> to vector<4x16xf32>
    %c172 = arith.constant 172 : index
    %c0_50 = arith.constant 0 : index
    %100 = vector.load %arg7[%c172, %c0_50] : memref<512x16xf32, #tpu.memory_space<vmem>>, vector<4x16xf32>
    tpu.vector_store %arg7[%c172, %c0_50], %99 {strides = array<i32>} : memref<512x16xf32, #tpu.memory_space<vmem>>, vector<4x16xf32>,
    %101 = vector.extract_strided_slice %12 {offsets = [0, 44], sizes = [4, 16], strides = [1, 1]} : vector<4x256xf32> to vector<4x16xf32>
    %c176 = arith.constant 176 : index
    %c0_51 = arith.constant 0 : index
    %102 = vector.load %arg7[%c176, %c0_51] : memref<512x16xf32, #tpu.memory_space<vmem>>, vector<4x16xf32>
    tpu.vector_store %arg7[%c176, %c0_51], %101 {strides = array<i32>} : memref<512x16xf32, #tpu.memory_space<vmem>>, vector<4x16xf32>,
    %103 = vector.extract_strided_slice %12 {offsets = [0, 45], sizes = [4, 16], strides = [1, 1]} : vector<4x256xf32> to vector<4x16xf32>
    %c180 = arith.constant 180 : index
    %c0_52 = arith.constant 0 : index
    %104 = vector.load %arg7[%c180, %c0_52] : memref<512x16xf32, #tpu.memory_space<vmem>>, vector<4x16xf32>
    tpu.vector_store %arg7[%c180, %c0_52], %103 {strides = array<i32>} : memref<512x16xf32, #tpu.memory_space<vmem>>, vector<4x16xf32>,
    %105 = vector.extract_strided_slice %12 {offsets = [0, 46], sizes = [4, 16], strides = [1, 1]} : vector<4x256xf32> to vector<4x16xf32>
    %c184 = arith.constant 184 : index
    %c0_53 = arith.constant 0 : index
    %106 = vector.load %arg7[%c184, %c0_53] : memref<512x16xf32, #tpu.memory_space<vmem>>, vector<4x16xf32>
    tpu.vector_store %arg7[%c184, %c0_53], %105 {strides = array<i32>} : memref<512x16xf32, #tpu.memory_space<vmem>>, vector<4x16xf32>,
    %107 = vector.extract_strided_slice %12 {offsets = [0, 47], sizes = [4, 16], strides = [1, 1]} : vector<4x256xf32> to vector<4x16xf32>
    %c188 = arith.constant 188 : index
    %c0_54 = arith.constant 0 : index
    %108 = vector.load %arg7[%c188, %c0_54] : memref<512x16xf32, #tpu.memory_space<vmem>>, vector<4x16xf32>
    tpu.vector_store %arg7[%c188, %c0_54], %107 {strides = array<i32>} : memref<512x16xf32, #tpu.memory_space<vmem>>, vector<4x16xf32>,
    %109 = vector.extract_strided_slice %12 {offsets = [0, 48], sizes = [4, 16], strides = [1, 1]} : vector<4x256xf32> to vector<4x16xf32>
    %c192 = arith.constant 192 : index
    %c0_55 = arith.constant 0 : index
    %110 = vector.load %arg7[%c192, %c0_55] : memref<512x16xf32, #tpu.memory_space<vmem>>, vector<4x16xf32>
    tpu.vector_store %arg7[%c192, %c0_55], %109 {strides = array<i32>} : memref<512x16xf32, #tpu.memory_space<vmem>>, vector<4x16xf32>,
    %111 = vector.extract_strided_slice %12 {offsets = [0, 49], sizes = [4, 16], strides = [1, 1]} : vector<4x256xf32> to vector<4x16xf32>
    %c196 = arith.constant 196 : index
    %c0_56 = arith.constant 0 : index
    %112 = vector.load %arg7[%c196, %c0_56] : memref<512x16xf32, #tpu.memory_space<vmem>>, vector<4x16xf32>
    tpu.vector_store %arg7[%c196, %c0_56], %111 {strides = array<i32>} : memref<512x16xf32, #tpu.memory_space<vmem>>, vector<4x16xf32>,
    %113 = vector.extract_strided_slice %12 {offsets = [0, 50], sizes = [4, 16], strides = [1, 1]} : vector<4x256xf32> to vector<4x16xf32>
    %c200 = arith.constant 200 : index
    %c0_57 = arith.constant 0 : index
    %114 = vector.load %arg7[%c200, %c0_57] : memref<512x16xf32, #tpu.memory_space<vmem>>, vector<4x16xf32>
    tpu.vector_store %arg7[%c200, %c0_57], %113 {strides = array<i32>} : memref<512x16xf32, #tpu.memory_space<vmem>>, vector<4x16xf32>,
    %115 = vector.extract_strided_slice %12 {offsets = [0, 51], sizes = [4, 16], strides = [1, 1]} : vector<4x256xf32> to vector<4x16xf32>
    %c204 = arith.constant 204 : index
    %c0_58 = arith.constant 0 : index
    %116 = vector.load %arg7[%c204, %c0_58] : memref<512x16xf32, #tpu.memory_space<vmem>>, vector<4x16xf32>
    tpu.vector_store %arg7[%c204, %c0_58], %115 {strides = array<i32>} : memref<512x16xf32, #tpu.memory_space<vmem>>, vector<4x16xf32>,
    %117 = vector.extract_strided_slice %12 {offsets = [0, 52], sizes = [4, 16], strides = [1, 1]} : vector<4x256xf32> to vector<4x16xf32>
    %c208 = arith.constant 208 : index
    %c0_59 = arith.constant 0 : index
    %118 = vector.load %arg7[%c208, %c0_59] : memref<512x16xf32, #tpu.memory_space<vmem>>, vector<4x16xf32>
    tpu.vector_store %arg7[%c208, %c0_59], %117 {strides = array<i32>} : memref<512x16xf32, #tpu.memory_space<vmem>>, vector<4x16xf32>,
    %119 = vector.extract_strided_slice %12 {offsets = [0, 53], sizes = [4, 16], strides = [1, 1]} : vector<4x256xf32> to vector<4x16xf32>
    %c212 = arith.constant 212 : index
    %c0_60 = arith.constant 0 : index
    %120 = vector.load %arg7[%c212, %c0_60] : memref<512x16xf32, #tpu.memory_space<vmem>>, vector<4x16xf32>
    tpu.vector_store %arg7[%c212, %c0_60], %119 {strides = array<i32>} : memref<512x16xf32, #tpu.memory_space<vmem>>, vector<4x16xf32>,
    %121 = vector.extract_strided_slice %12 {offsets = [0, 54], sizes = [4, 16], strides = [1, 1]} : vector<4x256xf32> to vector<4x16xf32>
    %c216 = arith.constant 216 : index
    %c0_61 = arith.constant 0 : index
    %122 = vector.load %arg7[%c216, %c0_61] : memref<512x16xf32, #tpu.memory_space<vmem>>, vector<4x16xf32>
    tpu.vector_store %arg7[%c216, %c0_61], %121 {strides = array<i32>} : memref<512x16xf32, #tpu.memory_space<vmem>>, vector<4x16xf32>,
    %123 = vector.extract_strided_slice %12 {offsets = [0, 55], sizes = [4, 16], strides = [1, 1]} : vector<4x256xf32> to vector<4x16xf32>
    %c220 = arith.constant 220 : index
    %c0_62 = arith.constant 0 : index
    %124 = vector.load %arg7[%c220, %c0_62] : memref<512x16xf32, #tpu.memory_space<vmem>>, vector<4x16xf32>
    tpu.vector_store %arg7[%c220, %c0_62], %123 {strides = array<i32>} : memref<512x16xf32, #tpu.memory_space<vmem>>, vector<4x16xf32>,
    %125 = vector.extract_strided_slice %12 {offsets = [0, 56], sizes = [4, 16], strides = [1, 1]} : vector<4x256xf32> to vector<4x16xf32>
    %c224 = arith.constant 224 : index
    %c0_63 = arith.constant 0 : index
    %126 = vector.load %arg7[%c224, %c0_63] : memref<512x16xf32, #tpu.memory_space<vmem>>, vector<4x16xf32>
    tpu.vector_store %arg7[%c224, %c0_63], %125 {strides = array<i32>} : memref<512x16xf32, #tpu.memory_space<vmem>>, vector<4x16xf32>,
    %127 = vector.extract_strided_slice %12 {offsets = [0, 57], sizes = [4, 16], strides = [1, 1]} : vector<4x256xf32> to vector<4x16xf32>
    %c228 = arith.constant 228 : index
    %c0_64 = arith.constant 0 : index
    %128 = vector.load %arg7[%c228, %c0_64] : memref<512x16xf32, #tpu.memory_space<vmem>>, vector<4x16xf32>
    tpu.vector_store %arg7[%c228, %c0_64], %127 {strides = array<i32>} : memref<512x16xf32, #tpu.memory_space<vmem>>, vector<4x16xf32>,
    %129 = vector.extract_strided_slice %12 {offsets = [0, 58], sizes = [4, 16], strides = [1, 1]} : vector<4x256xf32> to vector<4x16xf32>
    %c232 = arith.constant 232 : index
    %c0_65 = arith.constant 0 : index
    %130 = vector.load %arg7[%c232, %c0_65] : memref<512x16xf32, #tpu.memory_space<vmem>>, vector<4x16xf32>
    tpu.vector_store %arg7[%c232, %c0_65], %129 {strides = array<i32>} : memref<512x16xf32, #tpu.memory_space<vmem>>, vector<4x16xf32>,
    %131 = vector.extract_strided_slice %12 {offsets = [0, 59], sizes = [4, 16], strides = [1, 1]} : vector<4x256xf32> to vector<4x16xf32>
    %c236 = arith.constant 236 : index
    %c0_66 = arith.constant 0 : index
    %132 = vector.load %arg7[%c236, %c0_66] : memref<512x16xf32, #tpu.memory_space<vmem>>, vector<4x16xf32>
    tpu.vector_store %arg7[%c236, %c0_66], %131 {strides = array<i32>} : memref<512x16xf32, #tpu.memory_space<vmem>>, vector<4x16xf32>,
    %133 = vector.extract_strided_slice %12 {offsets = [0, 60], sizes = [4, 16], strides = [1, 1]} : vector<4x256xf32> to vector<4x16xf32>
    %c240 = arith.constant 240 : index
    %c0_67 = arith.constant 0 : index
    %134 = vector.load %arg7[%c240, %c0_67] : memref<512x16xf32, #tpu.memory_space<vmem>>, vector<4x16xf32>
    tpu.vector_store %arg7[%c240, %c0_67], %133 {strides = array<i32>} : memref<512x16xf32, #tpu.memory_space<vmem>>, vector<4x16xf32>,
    %135 = vector.extract_strided_slice %12 {offsets = [0, 61], sizes = [4, 16], strides = [1, 1]} : vector<4x256xf32> to vector<4x16xf32>
    %c244 = arith.constant 244 : index
    %c0_68 = arith.constant 0 : index
    %136 = vector.load %arg7[%c244, %c0_68] : memref<512x16xf32, #tpu.memory_space<vmem>>, vector<4x16xf32>
    tpu.vector_store %arg7[%c244, %c0_68], %135 {strides = array<i32>} : memref<512x16xf32, #tpu.memory_space<vmem>>, vector<4x16xf32>,
    %137 = vector.extract_strided_slice %12 {offsets = [0, 62], sizes = [4, 16], strides = [1, 1]} : vector<4x256xf32> to vector<4x16xf32>
    %c248 = arith.constant 248 : index
    %c0_69 = arith.constant 0 : index
    %138 = vector.load %arg7[%c248, %c0_69] : memref<512x16xf32, #tpu.memory_space<vmem>>, vector<4x16xf32>
    tpu.vector_store %arg7[%c248, %c0_69], %137 {strides = array<i32>} : memref<512x16xf32, #tpu.memory_space<vmem>>, vector<4x16xf32>,
    %139 = vector.extract_strided_slice %12 {offsets = [0, 63], sizes = [4, 16], strides = [1, 1]} : vector<4x256xf32> to vector<4x16xf32>
    %c252 = arith.constant 252 : index
    %c0_70 = arith.constant 0 : index
    %140 = vector.load %arg7[%c252, %c0_70] : memref<512x16xf32, #tpu.memory_space<vmem>>, vector<4x16xf32>
    tpu.vector_store %arg7[%c252, %c0_70], %139 {strides = array<i32>} : memref<512x16xf32, #tpu.memory_space<vmem>>, vector<4x16xf32>,
    %141 = vector.extract_strided_slice %12 {offsets = [0, 64], sizes = [4, 16], strides = [1, 1]} : vector<4x256xf32> to vector<4x16xf32>
    %c256 = arith.constant 256 : index
    %c0_71 = arith.constant 0 : index
    %142 = vector.load %arg7[%c256, %c0_71] : memref<512x16xf32, #tpu.memory_space<vmem>>, vector<4x16xf32>
    tpu.vector_store %arg7[%c256, %c0_71], %141 {strides = array<i32>} : memref<512x16xf32, #tpu.memory_space<vmem>>, vector<4x16xf32>,
    %143 = vector.extract_strided_slice %12 {offsets = [0, 65], sizes = [4, 16], strides = [1, 1]} : vector<4x256xf32> to vector<4x16xf32>
    %c260 = arith.constant 260 : index
    %c0_72 = arith.constant 0 : index
    %144 = vector.load %arg7[%c260, %c0_72] : memref<512x16xf32, #tpu.memory_space<vmem>>, vector<4x16xf32>
    tpu.vector_store %arg7[%c260, %c0_72], %143 {strides = array<i32>} : memref<512x16xf32, #tpu.memory_space<vmem>>, vector<4x16xf32>,
    %145 = vector.extract_strided_slice %12 {offsets = [0, 66], sizes = [4, 16], strides = [1, 1]} : vector<4x256xf32> to vector<4x16xf32>
    %c264 = arith.constant 264 : index
    %c0_73 = arith.constant 0 : index
    %146 = vector.load %arg7[%c264, %c0_73] : memref<512x16xf32, #tpu.memory_space<vmem>>, vector<4x16xf32>
    tpu.vector_store %arg7[%c264, %c0_73], %145 {strides = array<i32>} : memref<512x16xf32, #tpu.memory_space<vmem>>, vector<4x16xf32>,
    %147 = vector.extract_strided_slice %12 {offsets = [0, 67], sizes = [4, 16], strides = [1, 1]} : vector<4x256xf32> to vector<4x16xf32>
    %c268 = arith.constant 268 : index
    %c0_74 = arith.constant 0 : index
    %148 = vector.load %arg7[%c268, %c0_74] : memref<512x16xf32, #tpu.memory_space<vmem>>, vector<4x16xf32>
    tpu.vector_store %arg7[%c268, %c0_74], %147 {strides = array<i32>} : memref<512x16xf32, #tpu.memory_space<vmem>>, vector<4x16xf32>,
    %149 = vector.extract_strided_slice %12 {offsets = [0, 68], sizes = [4, 16], strides = [1, 1]} : vector<4x256xf32> to vector<4x16xf32>
    %c272 = arith.constant 272 : index
    %c0_75 = arith.constant 0 : index
    %150 = vector.load %arg7[%c272, %c0_75] : memref<512x16xf32, #tpu.memory_space<vmem>>, vector<4x16xf32>
    tpu.vector_store %arg7[%c272, %c0_75], %149 {strides = array<i32>} : memref<512x16xf32, #tpu.memory_space<vmem>>, vector<4x16xf32>,
    %151 = vector.extract_strided_slice %12 {offsets = [0, 69], sizes = [4, 16], strides = [1, 1]} : vector<4x256xf32> to vector<4x16xf32>
    %c276 = arith.constant 276 : index
    %c0_76 = arith.constant 0 : index
    %152 = vector.load %arg7[%c276, %c0_76] : memref<512x16xf32, #tpu.memory_space<vmem>>, vector<4x16xf32>
    tpu.vector_store %arg7[%c276, %c0_76], %151 {strides = array<i32>} : memref<512x16xf32, #tpu.memory_space<vmem>>, vector<4x16xf32>,
    %153 = vector.extract_strided_slice %12 {offsets = [0, 70], sizes = [4, 16], strides = [1, 1]} : vector<4x256xf32> to vector<4x16xf32>
    %c280 = arith.constant 280 : index
    %c0_77 = arith.constant 0 : index
    %154 = vector.load %arg7[%c280, %c0_77] : memref<512x16xf32, #tpu.memory_space<vmem>>, vector<4x16xf32>
    tpu.vector_store %arg7[%c280, %c0_77], %153 {strides = array<i32>} : memref<512x16xf32, #tpu.memory_space<vmem>>, vector<4x16xf32>,
    %155 = vector.extract_strided_slice %12 {offsets = [0, 71], sizes = [4, 16], strides = [1, 1]} : vector<4x256xf32> to vector<4x16xf32>
    %c284 = arith.constant 284 : index
    %c0_78 = arith.constant 0 : index
    %156 = vector.load %arg7[%c284, %c0_78] : memref<512x16xf32, #tpu.memory_space<vmem>>, vector<4x16xf32>
    tpu.vector_store %arg7[%c284, %c0_78], %155 {strides = array<i32>} : memref<512x16xf32, #tpu.memory_space<vmem>>, vector<4x16xf32>,
    %157 = vector.extract_strided_slice %12 {offsets = [0, 72], sizes = [4, 16], strides = [1, 1]} : vector<4x256xf32> to vector<4x16xf32>
    %c288 = arith.constant 288 : index
    %c0_79 = arith.constant 0 : index
    %158 = vector.load %arg7[%c288, %c0_79] : memref<512x16xf32, #tpu.memory_space<vmem>>, vector<4x16xf32>
    tpu.vector_store %arg7[%c288, %c0_79], %157 {strides = array<i32>} : memref<512x16xf32, #tpu.memory_space<vmem>>, vector<4x16xf32>,
    %159 = vector.extract_strided_slice %12 {offsets = [0, 73], sizes = [4, 16], strides = [1, 1]} : vector<4x256xf32> to vector<4x16xf32>
    %c292 = arith.constant 292 : index
    %c0_80 = arith.constant 0 : index
    %160 = vector.load %arg7[%c292, %c0_80] : memref<512x16xf32, #tpu.memory_space<vmem>>, vector<4x16xf32>
    tpu.vector_store %arg7[%c292, %c0_80], %159 {strides = array<i32>} : memref<512x16xf32, #tpu.memory_space<vmem>>, vector<4x16xf32>,
    %161 = vector.extract_strided_slice %12 {offsets = [0, 74], sizes = [4, 16], strides = [1, 1]} : vector<4x256xf32> to vector<4x16xf32>
    %c296 = arith.constant 296 : index
    %c0_81 = arith.constant 0 : index
    %162 = vector.load %arg7[%c296, %c0_81] : memref<512x16xf32, #tpu.memory_space<vmem>>, vector<4x16xf32>
    tpu.vector_store %arg7[%c296, %c0_81], %161 {strides = array<i32>} : memref<512x16xf32, #tpu.memory_space<vmem>>, vector<4x16xf32>,
    %163 = vector.extract_strided_slice %12 {offsets = [0, 75], sizes = [4, 16], strides = [1, 1]} : vector<4x256xf32> to vector<4x16xf32>
    %c300 = arith.constant 300 : index
    %c0_82 = arith.constant 0 : index
    %164 = vector.load %arg7[%c300, %c0_82] : memref<512x16xf32, #tpu.memory_space<vmem>>, vector<4x16xf32>
    tpu.vector_store %arg7[%c300, %c0_82], %163 {strides = array<i32>} : memref<512x16xf32, #tpu.memory_space<vmem>>, vector<4x16xf32>,
    %165 = vector.extract_strided_slice %12 {offsets = [0, 76], sizes = [4, 16], strides = [1, 1]} : vector<4x256xf32> to vector<4x16xf32>
    %c304 = arith.constant 304 : index
    %c0_83 = arith.constant 0 : index
    %166 = vector.load %arg7[%c304, %c0_83] : memref<512x16xf32, #tpu.memory_space<vmem>>, vector<4x16xf32>
    tpu.vector_store %arg7[%c304, %c0_83], %165 {strides = array<i32>} : memref<512x16xf32, #tpu.memory_space<vmem>>, vector<4x16xf32>,
    %167 = vector.extract_strided_slice %12 {offsets = [0, 77], sizes = [4, 16], strides = [1, 1]} : vector<4x256xf32> to vector<4x16xf32>
    %c308 = arith.constant 308 : index
    %c0_84 = arith.constant 0 : index
    %168 = vector.load %arg7[%c308, %c0_84] : memref<512x16xf32, #tpu.memory_space<vmem>>, vector<4x16xf32>
    tpu.vector_store %arg7[%c308, %c0_84], %167 {strides = array<i32>} : memref<512x16xf32, #tpu.memory_space<vmem>>, vector<4x16xf32>,
    %169 = vector.extract_strided_slice %12 {offsets = [0, 78], sizes = [4, 16], strides = [1, 1]} : vector<4x256xf32> to vector<4x16xf32>
    %c312 = arith.constant 312 : index
    %c0_85 = arith.constant 0 : index
    %170 = vector.load %arg7[%c312, %c0_85] : memref<512x16xf32, #tpu.memory_space<vmem>>, vector<4x16xf32>
    tpu.vector_store %arg7[%c312, %c0_85], %169 {strides = array<i32>} : memref<512x16xf32, #tpu.memory_space<vmem>>, vector<4x16xf32>,
    %171 = vector.extract_strided_slice %12 {offsets = [0, 79], sizes = [4, 16], strides = [1, 1]} : vector<4x256xf32> to vector<4x16xf32>
    %c316 = arith.constant 316 : index
    %c0_86 = arith.constant 0 : index
    %172 = vector.load %arg7[%c316, %c0_86] : memref<512x16xf32, #tpu.memory_space<vmem>>, vector<4x16xf32>
    tpu.vector_store %arg7[%c316, %c0_86], %171 {strides = array<i32>} : memref<512x16xf32, #tpu.memory_space<vmem>>, vector<4x16xf32>,
    %173 = vector.extract_strided_slice %12 {offsets = [0, 80], sizes = [4, 16], strides = [1, 1]} : vector<4x256xf32> to vector<4x16xf32>
    %c320 = arith.constant 320 : index
    %c0_87 = arith.constant 0 : index
    %174 = vector.load %arg7[%c320, %c0_87] : memref<512x16xf32, #tpu.memory_space<vmem>>, vector<4x16xf32>
    tpu.vector_store %arg7[%c320, %c0_87], %173 {strides = array<i32>} : memref<512x16xf32, #tpu.memory_space<vmem>>, vector<4x16xf32>,
    %175 = vector.extract_strided_slice %12 {offsets = [0, 81], sizes = [4, 16], strides = [1, 1]} : vector<4x256xf32> to vector<4x16xf32>
    %c324 = arith.constant 324 : index
    %c0_88 = arith.constant 0 : index
    %176 = vector.load %arg7[%c324, %c0_88] : memref<512x16xf32, #tpu.memory_space<vmem>>, vector<4x16xf32>
    tpu.vector_store %arg7[%c324, %c0_88], %175 {strides = array<i32>} : memref<512x16xf32, #tpu.memory_space<vmem>>, vector<4x16xf32>,
    %177 = vector.extract_strided_slice %12 {offsets = [0, 82], sizes = [4, 16], strides = [1, 1]} : vector<4x256xf32> to vector<4x16xf32>
    %c328 = arith.constant 328 : index
    %c0_89 = arith.constant 0 : index
    %178 = vector.load %arg7[%c328, %c0_89] : memref<512x16xf32, #tpu.memory_space<vmem>>, vector<4x16xf32>
    tpu.vector_store %arg7[%c328, %c0_89], %177 {strides = array<i32>} : memref<512x16xf32, #tpu.memory_space<vmem>>, vector<4x16xf32>,
    %179 = vector.extract_strided_slice %12 {offsets = [0, 83], sizes = [4, 16], strides = [1, 1]} : vector<4x256xf32> to vector<4x16xf32>
    %c332 = arith.constant 332 : index
    %c0_90 = arith.constant 0 : index
    %180 = vector.load %arg7[%c332, %c0_90] : memref<512x16xf32, #tpu.memory_space<vmem>>, vector<4x16xf32>
    tpu.vector_store %arg7[%c332, %c0_90], %179 {strides = array<i32>} : memref<512x16xf32, #tpu.memory_space<vmem>>, vector<4x16xf32>,
    %181 = vector.extract_strided_slice %12 {offsets = [0, 84], sizes = [4, 16], strides = [1, 1]} : vector<4x256xf32> to vector<4x16xf32>
    %c336 = arith.constant 336 : index
    %c0_91 = arith.constant 0 : index
    %182 = vector.load %arg7[%c336, %c0_91] : memref<512x16xf32, #tpu.memory_space<vmem>>, vector<4x16xf32>
    tpu.vector_store %arg7[%c336, %c0_91], %181 {strides = array<i32>} : memref<512x16xf32, #tpu.memory_space<vmem>>, vector<4x16xf32>,
    %183 = vector.extract_strided_slice %12 {offsets = [0, 85], sizes = [4, 16], strides = [1, 1]} : vector<4x256xf32> to vector<4x16xf32>
    %c340 = arith.constant 340 : index
    %c0_92 = arith.constant 0 : index
    %184 = vector.load %arg7[%c340, %c0_92] : memref<512x16xf32, #tpu.memory_space<vmem>>, vector<4x16xf32>
    tpu.vector_store %arg7[%c340, %c0_92], %183 {strides = array<i32>} : memref<512x16xf32, #tpu.memory_space<vmem>>, vector<4x16xf32>,
    %185 = vector.extract_strided_slice %12 {offsets = [0, 86], sizes = [4, 16], strides = [1, 1]} : vector<4x256xf32> to vector<4x16xf32>
    %c344 = arith.constant 344 : index
    %c0_93 = arith.constant 0 : index
    %186 = vector.load %arg7[%c344, %c0_93] : memref<512x16xf32, #tpu.memory_space<vmem>>, vector<4x16xf32>
    tpu.vector_store %arg7[%c344, %c0_93], %185 {strides = array<i32>} : memref<512x16xf32, #tpu.memory_space<vmem>>, vector<4x16xf32>,
    %187 = vector.extract_strided_slice %12 {offsets = [0, 87], sizes = [4, 16], strides = [1, 1]} : vector<4x256xf32> to vector<4x16xf32>
    %c348 = arith.constant 348 : index
    %c0_94 = arith.constant 0 : index
    %188 = vector.load %arg7[%c348, %c0_94] : memref<512x16xf32, #tpu.memory_space<vmem>>, vector<4x16xf32>
    tpu.vector_store %arg7[%c348, %c0_94], %187 {strides = array<i32>} : memref<512x16xf32, #tpu.memory_space<vmem>>, vector<4x16xf32>,
    %189 = vector.extract_strided_slice %12 {offsets = [0, 88], sizes = [4, 16], strides = [1, 1]} : vector<4x256xf32> to vector<4x16xf32>
    %c352 = arith.constant 352 : index
    %c0_95 = arith.constant 0 : index
    %190 = vector.load %arg7[%c352, %c0_95] : memref<512x16xf32, #tpu.memory_space<vmem>>, vector<4x16xf32>
    tpu.vector_store %arg7[%c352, %c0_95], %189 {strides = array<i32>} : memref<512x16xf32, #tpu.memory_space<vmem>>, vector<4x16xf32>,
    %191 = vector.extract_strided_slice %12 {offsets = [0, 89], sizes = [4, 16], strides = [1, 1]} : vector<4x256xf32> to vector<4x16xf32>
    %c356 = arith.constant 356 : index
    %c0_96 = arith.constant 0 : index
    %192 = vector.load %arg7[%c356, %c0_96] : memref<512x16xf32, #tpu.memory_space<vmem>>, vector<4x16xf32>
    tpu.vector_store %arg7[%c356, %c0_96], %191 {strides = array<i32>} : memref<512x16xf32, #tpu.memory_space<vmem>>, vector<4x16xf32>,
    %193 = vector.extract_strided_slice %12 {offsets = [0, 90], sizes = [4, 16], strides = [1, 1]} : vector<4x256xf32> to vector<4x16xf32>
    %c360 = arith.constant 360 : index
    %c0_97 = arith.constant 0 : index
    %194 = vector.load %arg7[%c360, %c0_97] : memref<512x16xf32, #tpu.memory_space<vmem>>, vector<4x16xf32>
    tpu.vector_store %arg7[%c360, %c0_97], %193 {strides = array<i32>} : memref<512x16xf32, #tpu.memory_space<vmem>>, vector<4x16xf32>,
    %195 = vector.extract_strided_slice %12 {offsets = [0, 91], sizes = [4, 16], strides = [1, 1]} : vector<4x256xf32> to vector<4x16xf32>
    %c364 = arith.constant 364 : index
    %c0_98 = arith.constant 0 : index
    %196 = vector.load %arg7[%c364, %c0_98] : memref<512x16xf32, #tpu.memory_space<vmem>>, vector<4x16xf32>
    tpu.vector_store %arg7[%c364, %c0_98], %195 {strides = array<i32>} : memref<512x16xf32, #tpu.memory_space<vmem>>, vector<4x16xf32>,
    %197 = vector.extract_strided_slice %12 {offsets = [0, 92], sizes = [4, 16], strides = [1, 1]} : vector<4x256xf32> to vector<4x16xf32>
    %c368 = arith.constant 368 : index
    %c0_99 = arith.constant 0 : index
    %198 = vector.load %arg7[%c368, %c0_99] : memref<512x16xf32, #tpu.memory_space<vmem>>, vector<4x16xf32>
    tpu.vector_store %arg7[%c368, %c0_99], %197 {strides = array<i32>} : memref<512x16xf32, #tpu.memory_space<vmem>>, vector<4x16xf32>,
    %199 = vector.extract_strided_slice %12 {offsets = [0, 93], sizes = [4, 16], strides = [1, 1]} : vector<4x256xf32> to vector<4x16xf32>
    %c372 = arith.constant 372 : index
    %c0_100 = arith.constant 0 : index
    %200 = vector.load %arg7[%c372, %c0_100] : memref<512x16xf32, #tpu.memory_space<vmem>>, vector<4x16xf32>
    tpu.vector_store %arg7[%c372, %c0_100], %199 {strides = array<i32>} : memref<512x16xf32, #tpu.memory_space<vmem>>, vector<4x16xf32>,
    %201 = vector.extract_strided_slice %12 {offsets = [0, 94], sizes = [4, 16], strides = [1, 1]} : vector<4x256xf32> to vector<4x16xf32>
    %c376 = arith.constant 376 : index
    %c0_101 = arith.constant 0 : index
    %202 = vector.load %arg7[%c376, %c0_101] : memref<512x16xf32, #tpu.memory_space<vmem>>, vector<4x16xf32>
    tpu.vector_store %arg7[%c376, %c0_101], %201 {strides = array<i32>} : memref<512x16xf32, #tpu.memory_space<vmem>>, vector<4x16xf32>,
    %203 = vector.extract_strided_slice %12 {offsets = [0, 95], sizes = [4, 16], strides = [1, 1]} : vector<4x256xf32> to vector<4x16xf32>
    %c380 = arith.constant 380 : index
    %c0_102 = arith.constant 0 : index
    %204 = vector.load %arg7[%c380, %c0_102] : memref<512x16xf32, #tpu.memory_space<vmem>>, vector<4x16xf32>
    tpu.vector_store %arg7[%c380, %c0_102], %203 {strides = array<i32>} : memref<512x16xf32, #tpu.memory_space<vmem>>, vector<4x16xf32>,
    %205 = vector.extract_strided_slice %12 {offsets = [0, 96], sizes = [4, 16], strides = [1, 1]} : vector<4x256xf32> to vector<4x16xf32>
    %c384 = arith.constant 384 : index
    %c0_103 = arith.constant 0 : index
    %206 = vector.load %arg7[%c384, %c0_103] : memref<512x16xf32, #tpu.memory_space<vmem>>, vector<4x16xf32>
    tpu.vector_store %arg7[%c384, %c0_103], %205 {strides = array<i32>} : memref<512x16xf32, #tpu.memory_space<vmem>>, vector<4x16xf32>,
    %207 = vector.extract_strided_slice %12 {offsets = [0, 97], sizes = [4, 16], strides = [1, 1]} : vector<4x256xf32> to vector<4x16xf32>
    %c388 = arith.constant 388 : index
    %c0_104 = arith.constant 0 : index
    %208 = vector.load %arg7[%c388, %c0_104] : memref<512x16xf32, #tpu.memory_space<vmem>>, vector<4x16xf32>
    tpu.vector_store %arg7[%c388, %c0_104], %207 {strides = array<i32>} : memref<512x16xf32, #tpu.memory_space<vmem>>, vector<4x16xf32>,
    %209 = vector.extract_strided_slice %12 {offsets = [0, 98], sizes = [4, 16], strides = [1, 1]} : vector<4x256xf32> to vector<4x16xf32>
    %c392 = arith.constant 392 : index
    %c0_105 = arith.constant 0 : index
    %210 = vector.load %arg7[%c392, %c0_105] : memref<512x16xf32, #tpu.memory_space<vmem>>, vector<4x16xf32>
    tpu.vector_store %arg7[%c392, %c0_105], %209 {strides = array<i32>} : memref<512x16xf32, #tpu.memory_space<vmem>>, vector<4x16xf32>,
    %211 = vector.extract_strided_slice %12 {offsets = [0, 99], sizes = [4, 16], strides = [1, 1]} : vector<4x256xf32> to vector<4x16xf32>
    %c396 = arith.constant 396 : index
    %c0_106 = arith.constant 0 : index
    %212 = vector.load %arg7[%c396, %c0_106] : memref<512x16xf32, #tpu.memory_space<vmem>>, vector<4x16xf32>
    tpu.vector_store %arg7[%c396, %c0_106], %211 {strides = array<i32>} : memref<512x16xf32, #tpu.memory_space<vmem>>, vector<4x16xf32>,
    %213 = vector.extract_strided_slice %12 {offsets = [0, 100], sizes = [4, 16], strides = [1, 1]} : vector<4x256xf32> to vector<4x16xf32>
    %c400 = arith.constant 400 : index
    %c0_107 = arith.constant 0 : index
    %214 = vector.load %arg7[%c400, %c0_107] : memref<512x16xf32, #tpu.memory_space<vmem>>, vector<4x16xf32>
    tpu.vector_store %arg7[%c400, %c0_107], %213 {strides = array<i32>} : memref<512x16xf32, #tpu.memory_space<vmem>>, vector<4x16xf32>,
    %215 = vector.extract_strided_slice %12 {offsets = [0, 101], sizes = [4, 16], strides = [1, 1]} : vector<4x256xf32> to vector<4x16xf32>
    %c404 = arith.constant 404 : index
    %c0_108 = arith.constant 0 : index
    %216 = vector.load %arg7[%c404, %c0_108] : memref<512x16xf32, #tpu.memory_space<vmem>>, vector<4x16xf32>
    tpu.vector_store %arg7[%c404, %c0_108], %215 {strides = array<i32>} : memref<512x16xf32, #tpu.memory_space<vmem>>, vector<4x16xf32>,
    %217 = vector.extract_strided_slice %12 {offsets = [0, 102], sizes = [4, 16], strides = [1, 1]} : vector<4x256xf32> to vector<4x16xf32>
    %c408 = arith.constant 408 : index
    %c0_109 = arith.constant 0 : index
    %218 = vector.load %arg7[%c408, %c0_109] : memref<512x16xf32, #tpu.memory_space<vmem>>, vector<4x16xf32>
    tpu.vector_store %arg7[%c408, %c0_109], %217 {strides = array<i32>} : memref<512x16xf32, #tpu.memory_space<vmem>>, vector<4x16xf32>,
    %219 = vector.extract_strided_slice %12 {offsets = [0, 103], sizes = [4, 16], strides = [1, 1]} : vector<4x256xf32> to vector<4x16xf32>
    %c412 = arith.constant 412 : index
    %c0_110 = arith.constant 0 : index
    %220 = vector.load %arg7[%c412, %c0_110] : memref<512x16xf32, #tpu.memory_space<vmem>>, vector<4x16xf32>
    tpu.vector_store %arg7[%c412, %c0_110], %219 {strides = array<i32>} : memref<512x16xf32, #tpu.memory_space<vmem>>, vector<4x16xf32>,
    %221 = vector.extract_strided_slice %12 {offsets = [0, 104], sizes = [4, 16], strides = [1, 1]} : vector<4x256xf32> to vector<4x16xf32>
    %c416 = arith.constant 416 : index
    %c0_111 = arith.constant 0 : index
    %222 = vector.load %arg7[%c416, %c0_111] : memref<512x16xf32, #tpu.memory_space<vmem>>, vector<4x16xf32>
    tpu.vector_store %arg7[%c416, %c0_111], %221 {strides = array<i32>} : memref<512x16xf32, #tpu.memory_space<vmem>>, vector<4x16xf32>,
    %223 = vector.extract_strided_slice %12 {offsets = [0, 105], sizes = [4, 16], strides = [1, 1]} : vector<4x256xf32> to vector<4x16xf32>
    %c420 = arith.constant 420 : index
    %c0_112 = arith.constant 0 : index
    %224 = vector.load %arg7[%c420, %c0_112] : memref<512x16xf32, #tpu.memory_space<vmem>>, vector<4x16xf32>
    tpu.vector_store %arg7[%c420, %c0_112], %223 {strides = array<i32>} : memref<512x16xf32, #tpu.memory_space<vmem>>, vector<4x16xf32>,
    %225 = vector.extract_strided_slice %12 {offsets = [0, 106], sizes = [4, 16], strides = [1, 1]} : vector<4x256xf32> to vector<4x16xf32>
    %c424 = arith.constant 424 : index
    %c0_113 = arith.constant 0 : index
    %226 = vector.load %arg7[%c424, %c0_113] : memref<512x16xf32, #tpu.memory_space<vmem>>, vector<4x16xf32>
    tpu.vector_store %arg7[%c424, %c0_113], %225 {strides = array<i32>} : memref<512x16xf32, #tpu.memory_space<vmem>>, vector<4x16xf32>,
    %227 = vector.extract_strided_slice %12 {offsets = [0, 107], sizes = [4, 16], strides = [1, 1]} : vector<4x256xf32> to vector<4x16xf32>
    %c428 = arith.constant 428 : index
    %c0_114 = arith.constant 0 : index
    %228 = vector.load %arg7[%c428, %c0_114] : memref<512x16xf32, #tpu.memory_space<vmem>>, vector<4x16xf32>
    tpu.vector_store %arg7[%c428, %c0_114], %227 {strides = array<i32>} : memref<512x16xf32, #tpu.memory_space<vmem>>, vector<4x16xf32>,
    %229 = vector.extract_strided_slice %12 {offsets = [0, 108], sizes = [4, 16], strides = [1, 1]} : vector<4x256xf32> to vector<4x16xf32>
    %c432 = arith.constant 432 : index
    %c0_115 = arith.constant 0 : index
    %230 = vector.load %arg7[%c432, %c0_115] : memref<512x16xf32, #tpu.memory_space<vmem>>, vector<4x16xf32>
    tpu.vector_store %arg7[%c432, %c0_115], %229 {strides = array<i32>} : memref<512x16xf32, #tpu.memory_space<vmem>>, vector<4x16xf32>,
    %231 = vector.extract_strided_slice %12 {offsets = [0, 109], sizes = [4, 16], strides = [1, 1]} : vector<4x256xf32> to vector<4x16xf32>
    %c436 = arith.constant 436 : index
    %c0_116 = arith.constant 0 : index
    %232 = vector.load %arg7[%c436, %c0_116] : memref<512x16xf32, #tpu.memory_space<vmem>>, vector<4x16xf32>
    tpu.vector_store %arg7[%c436, %c0_116], %231 {strides = array<i32>} : memref<512x16xf32, #tpu.memory_space<vmem>>, vector<4x16xf32>,
    %233 = vector.extract_strided_slice %12 {offsets = [0, 110], sizes = [4, 16], strides = [1, 1]} : vector<4x256xf32> to vector<4x16xf32>
    %c440 = arith.constant 440 : index
    %c0_117 = arith.constant 0 : index
    %234 = vector.load %arg7[%c440, %c0_117] : memref<512x16xf32, #tpu.memory_space<vmem>>, vector<4x16xf32>
    tpu.vector_store %arg7[%c440, %c0_117], %233 {strides = array<i32>} : memref<512x16xf32, #tpu.memory_space<vmem>>, vector<4x16xf32>,
    %235 = vector.extract_strided_slice %12 {offsets = [0, 111], sizes = [4, 16], strides = [1, 1]} : vector<4x256xf32> to vector<4x16xf32>
    %c444 = arith.constant 444 : index
    %c0_118 = arith.constant 0 : index
    %236 = vector.load %arg7[%c444, %c0_118] : memref<512x16xf32, #tpu.memory_space<vmem>>, vector<4x16xf32>
    tpu.vector_store %arg7[%c444, %c0_118], %235 {strides = array<i32>} : memref<512x16xf32, #tpu.memory_space<vmem>>, vector<4x16xf32>,
    %237 = vector.extract_strided_slice %12 {offsets = [0, 112], sizes = [4, 16], strides = [1, 1]} : vector<4x256xf32> to vector<4x16xf32>
    %c448 = arith.constant 448 : index
    %c0_119 = arith.constant 0 : index
    %238 = vector.load %arg7[%c448, %c0_119] : memref<512x16xf32, #tpu.memory_space<vmem>>, vector<4x16xf32>
    tpu.vector_store %arg7[%c448, %c0_119], %237 {strides = array<i32>} : memref<512x16xf32, #tpu.memory_space<vmem>>, vector<4x16xf32>,
    %239 = vector.extract_strided_slice %12 {offsets = [0, 113], sizes = [4, 16], strides = [1, 1]} : vector<4x256xf32> to vector<4x16xf32>
    %c452 = arith.constant 452 : index
    %c0_120 = arith.constant 0 : index
    %240 = vector.load %arg7[%c452, %c0_120] : memref<512x16xf32, #tpu.memory_space<vmem>>, vector<4x16xf32>
    tpu.vector_store %arg7[%c452, %c0_120], %239 {strides = array<i32>} : memref<512x16xf32, #tpu.memory_space<vmem>>, vector<4x16xf32>,
    %241 = vector.extract_strided_slice %12 {offsets = [0, 114], sizes = [4, 16], strides = [1, 1]} : vector<4x256xf32> to vector<4x16xf32>
    %c456 = arith.constant 456 : index
    %c0_121 = arith.constant 0 : index
    %242 = vector.load %arg7[%c456, %c0_121] : memref<512x16xf32, #tpu.memory_space<vmem>>, vector<4x16xf32>
    tpu.vector_store %arg7[%c456, %c0_121], %241 {strides = array<i32>} : memref<512x16xf32, #tpu.memory_space<vmem>>, vector<4x16xf32>,
    %243 = vector.extract_strided_slice %12 {offsets = [0, 115], sizes = [4, 16], strides = [1, 1]} : vector<4x256xf32> to vector<4x16xf32>
    %c460 = arith.constant 460 : index
    %c0_122 = arith.constant 0 : index
    %244 = vector.load %arg7[%c460, %c0_122] : memref<512x16xf32, #tpu.memory_space<vmem>>, vector<4x16xf32>
    tpu.vector_store %arg7[%c460, %c0_122], %243 {strides = array<i32>} : memref<512x16xf32, #tpu.memory_space<vmem>>, vector<4x16xf32>,
    %245 = vector.extract_strided_slice %12 {offsets = [0, 116], sizes = [4, 16], strides = [1, 1]} : vector<4x256xf32> to vector<4x16xf32>
    %c464 = arith.constant 464 : index
    %c0_123 = arith.constant 0 : index
    %246 = vector.load %arg7[%c464, %c0_123] : memref<512x16xf32, #tpu.memory_space<vmem>>, vector<4x16xf32>
    tpu.vector_store %arg7[%c464, %c0_123], %245 {strides = array<i32>} : memref<512x16xf32, #tpu.memory_space<vmem>>, vector<4x16xf32>,
    %247 = vector.extract_strided_slice %12 {offsets = [0, 117], sizes = [4, 16], strides = [1, 1]} : vector<4x256xf32> to vector<4x16xf32>
    %c468 = arith.constant 468 : index
    %c0_124 = arith.constant 0 : index
    %248 = vector.load %arg7[%c468, %c0_124] : memref<512x16xf32, #tpu.memory_space<vmem>>, vector<4x16xf32>
    tpu.vector_store %arg7[%c468, %c0_124], %247 {strides = array<i32>} : memref<512x16xf32, #tpu.memory_space<vmem>>, vector<4x16xf32>,
    %249 = vector.extract_strided_slice %12 {offsets = [0, 118], sizes = [4, 16], strides = [1, 1]} : vector<4x256xf32> to vector<4x16xf32>
    %c472 = arith.constant 472 : index
    %c0_125 = arith.constant 0 : index
    %250 = vector.load %arg7[%c472, %c0_125] : memref<512x16xf32, #tpu.memory_space<vmem>>, vector<4x16xf32>
    tpu.vector_store %arg7[%c472, %c0_125], %249 {strides = array<i32>} : memref<512x16xf32, #tpu.memory_space<vmem>>, vector<4x16xf32>,
    %251 = vector.extract_strided_slice %12 {offsets = [0, 119], sizes = [4, 16], strides = [1, 1]} : vector<4x256xf32> to vector<4x16xf32>
    %c476 = arith.constant 476 : index
    %c0_126 = arith.constant 0 : index
    %252 = vector.load %arg7[%c476, %c0_126] : memref<512x16xf32, #tpu.memory_space<vmem>>, vector<4x16xf32>
    tpu.vector_store %arg7[%c476, %c0_126], %251 {strides = array<i32>} : memref<512x16xf32, #tpu.memory_space<vmem>>, vector<4x16xf32>,
    %253 = vector.extract_strided_slice %12 {offsets = [0, 120], sizes = [4, 16], strides = [1, 1]} : vector<4x256xf32> to vector<4x16xf32>
    %c480 = arith.constant 480 : index
    %c0_127 = arith.constant 0 : index
    %254 = vector.load %arg7[%c480, %c0_127] : memref<512x16xf32, #tpu.memory_space<vmem>>, vector<4x16xf32>
    tpu.vector_store %arg7[%c480, %c0_127], %253 {strides = array<i32>} : memref<512x16xf32, #tpu.memory_space<vmem>>, vector<4x16xf32>,
    %255 = vector.extract_strided_slice %12 {offsets = [0, 121], sizes = [4, 16], strides = [1, 1]} : vector<4x256xf32> to vector<4x16xf32>
    %c484 = arith.constant 484 : index
    %c0_128 = arith.constant 0 : index
    %256 = vector.load %arg7[%c484, %c0_128] : memref<512x16xf32, #tpu.memory_space<vmem>>, vector<4x16xf32>
    tpu.vector_store %arg7[%c484, %c0_128], %255 {strides = array<i32>} : memref<512x16xf32, #tpu.memory_space<vmem>>, vector<4x16xf32>,
    %257 = vector.extract_strided_slice %12 {offsets = [0, 122], sizes = [4, 16], strides = [1, 1]} : vector<4x256xf32> to vector<4x16xf32>
    %c488 = arith.constant 488 : index
    %c0_129 = arith.constant 0 : index
    %258 = vector.load %arg7[%c488, %c0_129] : memref<512x16xf32, #tpu.memory_space<vmem>>, vector<4x16xf32>
    tpu.vector_store %arg7[%c488, %c0_129], %257 {strides = array<i32>} : memref<512x16xf32, #tpu.memory_space<vmem>>, vector<4x16xf32>,
    %259 = vector.extract_strided_slice %12 {offsets = [0, 123], sizes = [4, 16], strides = [1, 1]} : vector<4x256xf32> to vector<4x16xf32>
    %c492 = arith.constant 492 : index
    %c0_130 = arith.constant 0 : index
    %260 = vector.load %arg7[%c492, %c0_130] : memref<512x16xf32, #tpu.memory_space<vmem>>, vector<4x16xf32>
    tpu.vector_store %arg7[%c492, %c0_130], %259 {strides = array<i32>} : memref<512x16xf32, #tpu.memory_space<vmem>>, vector<4x16xf32>,
    %261 = vector.extract_strided_slice %12 {offsets = [0, 124], sizes = [4, 16], strides = [1, 1]} : vector<4x256xf32> to vector<4x16xf32>
    %c496 = arith.constant 496 : index
    %c0_131 = arith.constant 0 : index
    %262 = vector.load %arg7[%c496, %c0_131] : memref<512x16xf32, #tpu.memory_space<vmem>>, vector<4x16xf32>
    tpu.vector_store %arg7[%c496, %c0_131], %261 {strides = array<i32>} : memref<512x16xf32, #tpu.memory_space<vmem>>, vector<4x16xf32>,
    %263 = vector.extract_strided_slice %12 {offsets = [0, 125], sizes = [4, 16], strides = [1, 1]} : vector<4x256xf32> to vector<4x16xf32>
    %c500 = arith.constant 500 : index
    %c0_132 = arith.constant 0 : index
    %264 = vector.load %arg7[%c500, %c0_132] : memref<512x16xf32, #tpu.memory_space<vmem>>, vector<4x16xf32>
    tpu.vector_store %arg7[%c500, %c0_132], %263 {strides = array<i32>} : memref<512x16xf32, #tpu.memory_space<vmem>>, vector<4x16xf32>,
    %265 = vector.extract_strided_slice %12 {offsets = [0, 126], sizes = [4, 16], strides = [1, 1]} : vector<4x256xf32> to vector<4x16xf32>
    %c504 = arith.constant 504 : index
    %c0_133 = arith.constant 0 : index
    %266 = vector.load %arg7[%c504, %c0_133] : memref<512x16xf32, #tpu.memory_space<vmem>>, vector<4x16xf32>
    tpu.vector_store %arg7[%c504, %c0_133], %265 {strides = array<i32>} : memref<512x16xf32, #tpu.memory_space<vmem>>, vector<4x16xf32>,
    %267 = vector.extract_strided_slice %12 {offsets = [0, 127], sizes = [4, 16], strides = [1, 1]} : vector<4x256xf32> to vector<4x16xf32>
    %c508 = arith.constant 508 : index
    %c0_134 = arith.constant 0 : index
    %268 = vector.load %arg7[%c508, %c0_134] : memref<512x16xf32, #tpu.memory_space<vmem>>, vector<4x16xf32>
    tpu.vector_store %arg7[%c508, %c0_134], %267 {strides = array<i32>} : memref<512x16xf32, #tpu.memory_space<vmem>>, vector<4x16xf32>,
    %c0_135 = arith.constant 0 : index
    %c0_136 = arith.constant 0 : index
    %269 = vector.load %arg3[%c0_135, %c0_136] : memref<48x512xf32, #tpu.memory_space<vmem>>, vector<48x512xf32>
    %c0_137 = arith.constant 0 : index
    %c0_138 = arith.constant 0 : index
    %270 = vector.load %arg7[%c0_137, %c0_138] : memref<512x16xf32, #tpu.memory_space<vmem>>, vector<512x16xf32>
    %cst = arith.constant dense<0.000000e+00> : vector<48x16xf32>
    %271 = tpu.matmul %269, %270, %cst {dimension_numbers = #tpu.dot_dimension_numbers<[1], [0], [0], [1], [0, 0, 1, 1], [], []>} : vector<48x512xf32>, vector<512x16xf32>, vector<48x16xf32> -> vector<48x16xf32>
    %c0_139 = arith.constant 0 : index
    %c0_140 = arith.constant 0 : index
    %272 = vector.load %arg4[%c0_139, %c0_140] : memref<48x1xf32, #tpu.memory_space<vmem>>, vector<48x1xf32>
    %273 = vector.broadcast %272 : vector<48x1xf32> to vector<48x16xf32>
    %274 = arith.addf %271, %273 : vector<48x16xf32>
    %275 = vector.extract_strided_slice %274 {offsets = [0, 0], sizes = [42, 16], strides = [1, 1]} : vector<48x16xf32> to vector<42x16xf32>
    %c0_141 = arith.constant 0 : index
    %c0_142 = arith.constant 0 : index
    %c0_143 = arith.constant 0 : index
    %276 = vector.load %arg5[%c0_141, %c0_142, %c0_143] : memref<1x42x16xf32, #tpu.memory_space<vmem>>, vector<1x42x16xf32>
    %277 = vector.shape_cast %276 : vector<1x42x16xf32> to vector<42x16xf32>
    %278 = vector.shape_cast %275 : vector<42x16xf32> to vector<1x42x16xf32>
    tpu.vector_store %arg5[%c0_141, %c0_142, %c0_143], %278 {strides = array<i32>} : memref<1x42x16xf32, #tpu.memory_space<vmem>>, vector<1x42x16xf32>,
    return
  }
  func.func @transform_0(%arg0: i32, %arg1: i32) -> (i32, i32, i32, i32) {
    %c0_i32 = arith.constant 0 : i32
    %c0_i32_0 = arith.constant 0 : i32
    %c0_i32_1 = arith.constant 0 : i32
    %c0_i32_2 = arith.constant 0 : i32
    return %arg0, %c0_i32, %c0_i32_0, %c0_i32_1 : i32, i32, i32, i32
  }
  func.func @transform_1(%arg0: i32, %arg1: i32) -> (i32, i32) {
    %c0_i32 = arith.constant 0 : i32
    %c0_i32_0 = arith.constant 0 : i32
    %c0_i32_1 = arith.constant 0 : i32
    return %c0_i32, %c0_i32_0 : i32, i32
  }
  func.func @transform_2(%arg0: i32, %arg1: i32) -> (i32, i32) {
    %c0_i32 = arith.constant 0 : i32
    %c0_i32_0 = arith.constant 0 : i32
    %c0_i32_1 = arith.constant 0 : i32
    return %c0_i32, %c0_i32_0 : i32, i32
  }
  func.func @transform_3(%arg0: i32, %arg1: i32) -> (i32, i32, i32) {
    %c0_i32 = arith.constant 0 : i32
    %c0_i32_0 = arith.constant 0 : i32
    return %arg0, %c0_i32, %arg1 : i32, i32, i32
  }
}

</mosaic_0001>

<bundles_post_ra>
// kernel: tpu_custom_call.1
= control target key start
LH: loop header
LB: loop body
LE: loop exit
PB: predicated region body
PF: predicated region fallthrough
CT: control target
= control target key end

     0   :  { %8 = vsyncpa [#allocation5], 0  ;;  %s2426_s0 = inlined_call_operand.hbm [shape: f32[2,4,16,16], index: 0, kind: input, shape index: {}]   ;;  %s2427_s1 = inlined_call_operand.hbm [shape: f32[48,512], index: 1, kind: input, shape index: {}]   ;;  %s2428_s2 = inlined_call_operand.vmem [shape: f32[48,1], index: 2, kind: input, shape index: {}]   ;;  %s2429_s3 = inlined_call_operand.vmem [shape: f32[2,42,16], index: 3, kind: output, shape index: {}]  }
   0x1   :  { %10 = vsyncpa [#allocation5 + $0x1], 0 }
   0x2   :  { %11 = vsyncpa [#allocation7], 0  ;;  %s1945_s12 = smov 0   ;;  %s1947_s13 = smov 0  }
   0x3   :  { %s1949_s14 = smov 0   ;;  %s1951_s15 = smov 0  }
   0x4   :  { %s1953_s16 = smov 0   ;;  %s1955_s17 = smov 0  }
   0x5 LB: > { %s1294_s18 = sadd.s32 4294967295, %s1788_s17   ;;  %p49_p0 = scmp.ne.s32.totalorder %s1772_s13, %s1768_s12  ;;  %s1788_s17 = sphi %s1955_s17, %s17_s17   ;;  %s1784_s16 = sphi %s1953_s16, %s2446_s16   ;;  %s1780_s15 = sphi %s1951_s15, %s2445_s15   ;;  %s1776_s14 = sphi %s1949_s14, %s2444_s14   ;;  %s1772_s13 = sphi %s1947_s13, %s2443_s13   ;;  %s1768_s12 = sphi %s1945_s12, %s2442_s12  }
   0x6   : > { %p1975_p1 = scmp.eq.s32.totalorder %s1294_s18, 0  ;;  %p1296_p2 = scmp.ge.s32.totalorder %s1788_s17, 1 }
   0x7   : > { %p130_p3 = scmp.lt.s32.totalorder %s1788_s17, 3  ;;  %s1790_s22 = smov [#allocation6]  }
   0x8   : > { %s2434_s19 = scalar_select %p1975_p1, 1, 0 }
   0x9   : > { %p1983_p4 = por %p1975_p1, %p49_p0  ;;  %p1987_p5 = pnand %p1296_p2, %p130_p3 }
   0xa   : > { %s142_s23 = sshll.u32 %s1790_s22, 4  ;;  %s29_s25 = sadd.s32 1, %s1784_s16  ;;  %s143_s23 = int_to_ptr.vmem [resolvable:$true] %s142_s23 }
   0xb   : > { %s2435_s20 = scalar_select %p1983_p4, 1, 0 }
   0xc   : > { %s2436_s21 = scalar_select %p1987_p5, 1, 0 }
   0xd   : > { %p1480_p6 = pneg %p1987_p5  ;;  %s1676_s28 = scalar_lea.hbm %s2427_s1, 3072 }
   0xe   : > { %p1677_p8 = scmp.ne.s32.totalorder %s2427_s1, %s1676_s28  ;;  %p1683_p12 = scmp.lt.u32.totalorder %s1676_s28, %s2427_s1 }
   0xf   : > { %p1995_p7 = pnand %p1480_p6, %p1975_p1 }
  0x11   : > { %p1678_p9 = pneg %p1995_p7 }
  0x13   : > { %p1679_p10 = pnand %p1678_p9, %p1677_p8 }
  0x15   : > { %p1680_p11 = pneg %p1679_p10 }
  0x17   : > { %p1685_p13 = pnand %p1683_p12, %p1680_p11 }
  0x19   : > { %1688 = shalt.err (!%p1685_p13)
}
  0x1a   : > { %s1689_s6 = scalar_lea.vmem %s143_s23, 3072  ;;  %p1697_p6 = scmp.lt.s32.totalorder %s143_s23, %s143_s23 }
  0x1b   : > { %p1690_p0 = scmp.ne.s32.totalorder %s143_s23, %s1689_s6  ;;  %p1698_p1 = scmp.lt.s32.totalorder %s1689_s6, %s1689_s6 }
  0x1d   : > { %p1692_p2 = pnand %p1690_p0, %p1678_p9  ;;  %p1699_p4 = por %p1698_p1, %p1697_p6 }
  0x1f   : > { %p1693_p3 = pneg %p1692_p2 }
  0x21   : > { %p1700_p5 = pnand %p1699_p4, %p1693_p3 }
  0x23   : > { %1703 = shalt.err (!%p1700_p5)
}
  0x24   : > { %s1791_s7 = smov 512   ;;  %s1792_s8 = smov 32  }
  0x25   : > { %1483 = dma.hbm_to_vmem [thread:$0]  (!%p1995_p7), %s2427_s1, 3072, %s143_s23, [#allocation7], %s1791_s7, %s1791_s7, %s1792_s8  }
  0x26   : > { %p31_p1 = scmp.ge.s32.totalorder %s29_s25, 2  ;;  %s36_s11 = sadd.s32 1, %s1776_s14 }
  0x27   : > { %p43_p4 = scmp.ne.s32.totalorder %s1776_s14, %s1772_s13  ;;  %p44_p5 = scmp.eq.s32.totalorder %s1788_s17, 0 }
  0x28   : > { %s2448_s25 = smov (%p31_p1, %s29_s25), 0  ;;  %p1489_p9 = scmp.lt.s32.totalorder %s1788_s17, 2 }
  0x29   : > { %p45_p8 = por %p44_p5, %p43_p4  ;;  %s33_s12 = ssub.s32 %s1784_s16, %s2448_s25 }
  0x2a   : > { %s159_s18 = sand.u32 1, %s1776_s14   ;;  %p34_p10 = scmp.eq.s32.totalorder %s33_s12, 0 }
  0x2b   : > { %s1299_s22 = sshll.u32 %s159_s18, 6  ;;  %s1308_s26 = sshll.u32 %s1784_s16, 10 }
  0x2c   : > { %s2028_s27 = scalar_select %p34_p10, %s1776_s14, %s36_s11  }
  0x2d   : > { %s2033_s23 = scalar_lea.hbm %s2426_s0, %s1308_s26  ;;  %s163_s29 = scalar_lea.vmem [#allocation4], %s1299_s22 }
  0x2e   : > { %s170_s30 = sshll.u32 %s163_s29, 4  ;;  %p2035_p7 = pnand %p1489_p9, %p45_p8  ;;  %s2039_s30 = int_to_ptr.vmem [resolvable:$true] %s170_s30 }
  0x2f   : > { %s2041_s5 = scalar_lea.sflag [#allocation5], %s159_s18  ;;  %s1704_s6 = scalar_lea.hbm %s2033_s23, 1024 }
  0x30   : > { %p1705_p11 = scmp.ne.s32.totalorder %s2033_s23, %s1704_s6  ;;  %p1706_p12 = pneg %p2035_p7 }
  0x31   : > { %s1709_s9 = scalar_lea.hbm %s2426_s0, 2048  ;;  %p1710_p2 = scmp.lt.u32.totalorder %s2033_s23, %s2426_s0 }
  0x32   : > { %p1707_p13 = pnand %p1706_p12, %p1705_p11  ;;  %p1711_p3 = scmp.lt.u32.totalorder %s1709_s9, %s1704_s6 }
  0x33   : > { %p1713_p1 = scmp.lt.u32.totalorder %s1704_s6, %s2033_s23 }
  0x34   : > { %p1708_p0 = pneg %p1707_p13  ;;  %p1712_p6 = por %p1711_p3, %p1710_p2 }
  0x36   : > { %p1714_p4 = por %p1713_p1, %p1712_p6 }
  0x38   : > { %p1715_p5 = pnand %p1714_p4, %p1708_p0 }
  0x3a   : > { %1718 = shalt.err (!%p1715_p5)
}
  0x3b   : > { %s1719_s12 = scalar_lea.vmem %s2039_s30, 1024  ;;  %s1793_s18 = smov [#allocation4]  }
  0x3c   : > { %p1720_p8 = scmp.ne.s32.totalorder %s2039_s30, %s1719_s12  ;;  %s1724_s22 = sshll.u32 %s1793_s18, 4  ;;  %s1725_s22 = int_to_ptr.vmem [resolvable:$false] %s1724_s22 }
  0x3d   : > { %s1726_s26 = scalar_lea.vmem %s1725_s22, 2048  ;;  %p1727_p11 = scmp.lt.s32.totalorder %s2039_s30, %s1725_s22 }
  0x3e   : > { %p1722_p9 = pnand %p1720_p8, %p1706_p12  ;;  %p1728_p13 = scmp.lt.s32.totalorder %s1726_s26, %s1719_s12 }
  0x40   : > { %p1723_p10 = pneg %p1722_p9  ;;  %p1729_p2 = por %p1728_p13, %p1727_p11 }
  0x42   : > { %p1730_p3 = pnand %p1729_p2, %p1723_p10 }
  0x44   : > { %1733 = shalt.err (!%p1730_p3)
}
  0x45   : > { %s1794_s24 = smov 128   ;;  %s1795_s28 = smov 8  }
  0x46   : > { %1487 = dma.hbm_to_vmem [thread:$0]  (!%p2035_p7), %s2033_s23, 1024, %s2039_s30, %s2041_s5, %s1794_s24, %s1794_s24, %s1795_s28  }
  0x47   : > { %p2439_p12 = scmp.ne.s32.totalorder %s2436_s21, 0 }
  0x48   : > { %s184_s29 = sand.u32 (!%p2439_p12), 1, %s1772_s13   ;;  %p2440_p0 = scmp.ne.s32.totalorder (!%p2439_p12), %s2435_s20, 0 }
  0x49   : > { %182 = sbr.rel (%p2439_p12) target bundleno = 876 (0x36c), region = 32  ;;  %s1303_s6 = sshll.u32 (!%p2439_p12), %s184_s29, 6 }
  0x4a   : > { %s185_s7 = scalar_lea.sflag (!%p2439_p12), [#allocation5], %s184_s29  ;;  %s188_s8 = scalar_lea.vmem (!%p2439_p12), [#allocation4], %s1303_s6 }
  0x50   : > { %1759 = dma.done.wait (%p2440_p0), %s185_s7, 1024  }
  0x51   : > { %1761 = vsyncadd (%p2440_p0), %s185_s7, 4294966272  ;;  %p2441_p6 = scmp.ne.s32.totalorder %s2434_s19, 0 }
  0x53   : > { %1763 = dma.done.wait (%p2441_p6), [#allocation7], 3072  }
  0x54   : > { %1765 = vsyncadd (%p2441_p6), [#allocation7], 4294964224  ;;  %v1796_v0 = vmov 0.0   ;;  %vm241_vm0 = vcmask 130048   ;;  %v233_v1 = vld [vmem:[%s188_s8] sm:$0xff]  ;;  %v234_v2 = vld [vmem:[%s188_s8 + $0x8] sm:$0xff] }
  0x55   : > { %230 = vst [vmem:[#allocation2] sm:$0xf] %v1796_v0  ;;  %231 = vst [vmem:[#allocation2 + $0x4] sm:$0xf] %v1796_v0  ;;  %v235_v3 = vld [vmem:[%s188_s8 + $0x10] sm:$0xff]  ;;  %v236_v4 = vld [vmem:[%s188_s8 + $0x18] sm:$0xff] }
  0x56   : > { %v237_v5 = vld [vmem:[%s188_s8 + $0x20] sm:$0xff]  ;;  %v238_v6 = vld [vmem:[%s188_s8 + $0x28] sm:$0xff]  ;;  %v242_v7 = vsel %vm241_vm0, %v233_v1, 0.0  ;;  %v243_v8 = vsel %vm241_vm0, %v234_v2, 0.0  ;;  %v251_v9 = vsel %vm241_vm0, %v235_v3, 0.0  ;;  %v239_v10 = vld [vmem:[%s188_s8 + $0x30] sm:$0xff] }
  0x57   : > { %v240_v11 = vld [vmem:[%s188_s8 + $0x38] sm:$0xff]  ;;  %v244_v12 = vadd.f32 %v243_v8, %v242_v7  ;;  %v252_v13 = vsel %vm241_vm0, %v236_v4, 0.0  ;;  %v260_v14 = vsel %vm241_vm0, %v237_v5, 0.0  ;;  %v261_v15 = vsel %vm241_vm0, %v238_v6, 0.0  ;;  %s1797_s19 = smov 15   ;;  %s1798_s20 = smov 14  }
  0x58   : > { %v253_v16 = vadd.f32 %v252_v13, %v251_v9  ;;  %v262_v17 = vadd.f32 %v261_v15, %v260_v14  ;;  %v269_v18 = vsel %vm241_vm0, %v239_v10, 0.0  ;;  %v270_v19 = vsel %vm241_vm0, %v240_v11, 0.0  ;;  %s1799_s21 = smov 64   ;;  %s1800_s23 = smov 95  }
  0x59   : > { %v245_v20 = vrot.slane %v244_v12, 4  ;;  %v271_v21 = vadd.f32 %v270_v19, %v269_v18  ;;  %vm287_vm1 = vcmask 1041409   ;;  %vm289_vm2 = vcmask 1042434   ;;  %s1801_s30 = smov 96   ;;  %s1802_s4 = smov 94  }
  0x5a   : > { %v254_v22 = vrot.slane %v253_v16, 4  ;;  %v263_v23 = vrot.slane %v262_v17, 4  ;;  %vm291_vm3 = vcmask 1043459   ;;  %vm296_vm4 = vcmask 650752   ;;  %s1803_s5 = smov 93   ;;  %s1804_s9 = smov 127  }
  0x5b   : > { %v246_v24 = vadd.f32 %v245_v20, %v244_v12  ;;  %v272_v25 = vrot.slane %v271_v21, 4  ;;  %vm301_vm5 = vcmask 125952   ;;  %s1805_s10 = smov 126   ;;  %s1806_s11 = smov 125   ;;  %vm757_vm6 = vcmask 121856  }
  0x5c   : > { %v255_v26 = vadd.f32 %v254_v22, %v253_v16  ;;  %v264_v27 = vadd.f32 %v263_v23, %v262_v17  ;;  %v2088_v30 = vld [vmem:[#allocation2 + $0x4] sm:$0xf]  ;;  %s1807_s12 = smov 32   ;;  %s1808_s18 = smov 31   ;;  %vm765_vm7 = vcmask 113664   ;;  %vm773_vm8 = vcmask 105472  }
  0x5d   : > { %v247_v28 = vrot.slane %v246_v24, 2  ;;  %v273_v29 = vadd.f32 %v272_v25, %v271_v21  ;;  %755 = vrot.lane.b32.xlu1 %v2088_v30, %s1797_s19  ;;  %s1809_s22 = smov 30   ;;  %s1810_s26 = smov 29   ;;  %vm781_vm9 = vcmask 97280   ;;  %vm789_vm10 = vcmask 89088  }
  0x5e   : > { %v256_v31 = vrot.slane %v255_v26, 2  ;;  %v265_v32 = vrot.slane %v264_v27, 2  ;;  %s1811_s24 = smov 63   ;;  %s1812_s28 = smov 62   ;;  %vm797_vm11 = vcmask 80896   ;;  %vm805_vm12 = vcmask 72704  }
  0x5f   : > { %v248_v33 = vadd.f32 %v247_v28, %v246_v24  ;;  %v274_v34 = vrot.slane %v273_v29, 2  ;;  %s1813_s29 = smov 61   ;;  %s1814_s6 = smov 92   ;;  %vm813_vm13 = vcmask 64512   ;;  %vm821_vm14 = vcmask 56320  }
  0x60   : > { %v257_v35 = vadd.f32 %v256_v31, %v255_v26  ;;  %v266_v36 = vadd.f32 %v265_v32, %v264_v27  ;;  %s1815_s7 = smov 91   ;;  %s1816_s8 = smov 90   ;;  %vm829_vm15 = vcmask 48128  }
  0x61   : > { %v249_v37 = vrot.slane %v248_v33, 1  ;;  %v275_v38 = vadd.f32 %v274_v34, %v273_v29  ;;  %763 = vrot.lane.b32.xlu1 %v2088_v30, %s1798_s20  ;;  %p218_p7 = scmp.lt.s32.totalorder %s1780_s15, 1 }
  0x62   : > { %v258_v39 = vrot.slane %v257_v35, 1  ;;  %v267_v40 = vrot.slane %v266_v36, 1 }
  0x63   : > { %v250_v41 = vadd.f32 %v249_v37, %v248_v33  ;;  %v276_v42 = vrot.slane %v275_v38, 1  ;;  %s2450_s15 = smov (!%p218_p7, %s1780_s15), 1 }
  0x64   : > { %v259_v43 = vadd.f32 %v258_v39, %v257_v35  ;;  %v268_v44 = vadd.f32 %v267_v40, %v266_v36 }
  0x65   : > { %v277_v45 = vadd.f32 %v276_v42, %v275_v38  ;;  %v279_v46 = vmul.f32 0.0625, %v250_v41 }
  0x66   : > { %v280_v47 = vmul.f32 0.0625, %v259_v43  ;;  %v281_v48 = vmul.f32 0.0625, %v268_v44 }
  0x67   : > { %v282_v49 = vmul.f32 0.0625, %v277_v45 }
  0x68   : > { %v288_v50 = vsel %vm287_vm1, %v280_v47, %v279_v46  ;;  %vm837_vm1 = vcmask 39936  }
  0x69   : > { %v290_v51 = vsel %vm289_vm2, %v281_v48, %v288_v50  ;;  %vm845_vm2 = vcmask 31744  }
  0x6a   : > { %v292_v52 = vsel %vm291_vm3, %v282_v49, %v290_v51  ;;  %vm853_vm3 = vcmask 23552  }
  0x6b   : > { %293 = vrot.lane.b32.xlu0 %v292_v52, %s1799_s21 }
  0xcf   : > { %v2152_v55 = vpop.permute.xlu1 %755 }
  0xd3   : > { %v2158_v56 = vpop.permute.xlu1 %763 }
  0xdd   : > { %v294_v53 = vpop.permute.xlu0 %293 }
  0xde   : > { %297 = vst.msk [vmem:[#allocation2] sm:$0xf] %vm296_vm4, %v294_v53  ;;  %vm861_vm4 = vcmask 15360  }
  0xe5   : > { %v2095_v54 = vld [vmem:[#allocation2] sm:$0xf] }
  0xe6   : > { %432 = vrot.lane.b32.xlu1 %v2095_v54, %s1800_s23  ;;  %428 = vrot.lane.b32.xlu0 %v2095_v54, %s1801_s30  ;;  %302 = vst.msk [vmem:[#allocation3] sm:$0xf] %vm301_vm5, %v2095_v54  ;;  %s1817_s23 = smov 89   ;;  %s1819_s30 = smov 123  }
  0xea   : > { %436 = vrot.lane.b32.xlu1 %v2095_v54, %s1802_s4  ;;  %440 = vrot.lane.b32.xlu0 %v2095_v54, %s1803_s5  ;;  %s1820_s4 = smov 122   ;;  %s1821_s5 = smov 121  }
  0xee   : > { %304 = vrot.lane.b32.xlu1 %v2095_v54, %s1804_s9  ;;  %308 = vrot.lane.b32.xlu0 %v2095_v54, %s1805_s10  ;;  %s1822_s9 = smov 28   ;;  %s1823_s10 = smov 27  }
  0xf2   : > { %312 = vrot.lane.b32.xlu1 %v2095_v54, %s1806_s11  ;;  %684 = vrot.lane.b32.xlu0 %v2095_v54, %s1807_s12  ;;  %s1824_s11 = smov 26   ;;  %s1825_s12 = smov 25  }
  0xf6   : > { %688 = vrot.lane.b32.xlu1 %v2095_v54, %s1808_s18  ;;  %692 = vrot.lane.b32.xlu0 %v2095_v54, %s1809_s22  ;;  %s1826_s18 = smov 60   ;;  %s1827_s22 = smov 59  }
  0xfa   : > { %696 = vrot.lane.b32.xlu1 %v2095_v54, %s1810_s26  ;;  %556 = vrot.lane.b32.xlu0 %v2095_v54, %s1799_s21  ;;  %s1818_s21 = smov 124   ;;  %s1828_s26 = smov 58  }
  0xfe   : > { %560 = vrot.lane.b32.xlu1 %v2095_v54, %s1811_s24  ;;  %564 = vrot.lane.b32.xlu0 %v2095_v54, %s1812_s28  ;;  %s1829_s24 = smov 57   ;;  %s1830_s28 = smov 88  }
 0x102   : > { %568 = vrot.lane.b32.xlu1 %v2095_v54, %s1813_s29  ;;  %444 = vrot.lane.b32.xlu0 %v2095_v54, %s1814_s6  ;;  %s1831_s29 = smov 87   ;;  %s1832_s6 = smov 86  }
 0x106   : > { %448 = vrot.lane.b32.xlu1 %v2095_v54, %s1815_s7  ;;  %452 = vrot.lane.b32.xlu0 %v2095_v54, %s1816_s8  ;;  %s1833_s7 = smov 85   ;;  %s1834_s8 = smov 120  }
 0x10a   : > { %456 = vrot.lane.b32.xlu1 %v2095_v54, %s1817_s23  ;;  %316 = vrot.lane.b32.xlu0 %v2095_v54, %s1818_s21  ;;  %s1835_s23 = smov 119   ;;  %s1836_s21 = smov 118  }
 0x10e   : > { %320 = vrot.lane.b32.xlu1 %v2095_v54, %s1819_s30  ;;  %324 = vrot.lane.b32.xlu0 %v2095_v54, %s1820_s4  ;;  %s1837_s30 = smov 117   ;;  %s1838_s4 = smov 24  }
 0x112   : > { %328 = vrot.lane.b32.xlu1 %v2095_v54, %s1821_s5  ;;  %700 = vrot.lane.b32.xlu0 %v2095_v54, %s1822_s9  ;;  %s1839_s5 = smov 23   ;;  %s1840_s9 = smov 22  }
 0x116   : > { %704 = vrot.lane.b32.xlu1 %v2095_v54, %s1823_s10  ;;  %708 = vrot.lane.b32.xlu0 %v2095_v54, %s1824_s11  ;;  %s1841_s10 = smov 21   ;;  %s1842_s11 = smov 56  }
 0x11a   : > { %712 = vrot.lane.b32.xlu1 %v2095_v54, %s1825_s12  ;;  %572 = vrot.lane.b32.xlu0 %v2095_v54, %s1826_s18  ;;  %s1843_s12 = smov 55   ;;  %s1844_s18 = smov 54  }
 0x11e   : > { %576 = vrot.lane.b32.xlu1 %v2095_v54, %s1827_s22  ;;  %580 = vrot.lane.b32.xlu0 %v2095_v54, %s1828_s26  ;;  %s1845_s22 = smov 53   ;;  %s1846_s26 = smov 84  }
 0x122   : > { %584 = vrot.lane.b32.xlu1 %v2095_v54, %s1829_s24  ;;  %460 = vrot.lane.b32.xlu0 %v2095_v54, %s1830_s28  ;;  %s1847_s24 = smov 83   ;;  %s1848_s28 = smov 82  }
 0x126   : > { %464 = vrot.lane.b32.xlu1 %v2095_v54, %s1831_s29  ;;  %468 = vrot.lane.b32.xlu0 %v2095_v54, %s1832_s6  ;;  %s1849_s29 = smov 81   ;;  %s1850_s6 = smov 116  }
 0x12a   : > { %472 = vrot.lane.b32.xlu1 %v2095_v54, %s1833_s7  ;;  %332 = vrot.lane.b32.xlu0 %v2095_v54, %s1834_s8  ;;  %s1851_s7 = smov 115   ;;  %s1852_s8 = smov 114  }
 0x12e   : > { %336 = vrot.lane.b32.xlu1 %v2095_v54, %s1835_s23  ;;  %340 = vrot.lane.b32.xlu0 %v2095_v54, %s1836_s21  ;;  %s1853_s23 = smov 113   ;;  %s1854_s21 = smov 20  }
 0x132   : > { %344 = vrot.lane.b32.xlu1 %v2095_v54, %s1837_s30  ;;  %716 = vrot.lane.b32.xlu0 %v2095_v54, %s1838_s4  ;;  %s1855_s30 = smov 19   ;;  %s1856_s4 = smov 18  }
 0x136   : > { %720 = vrot.lane.b32.xlu1 %v2095_v54, %s1839_s5  ;;  %724 = vrot.lane.b32.xlu0 %v2095_v54, %s1840_s9  ;;  %s1857_s5 = smov 17   ;;  %s1858_s9 = smov 52  }
 0x13a   : > { %728 = vrot.lane.b32.xlu1 %v2095_v54, %s1841_s10  ;;  %588 = vrot.lane.b32.xlu0 %v2095_v54, %s1842_s11  ;;  %s1859_s10 = smov 51   ;;  %s1860_s11 = smov 50  }
 0x13e   : > { %592 = vrot.lane.b32.xlu1 %v2095_v54, %s1843_s12  ;;  %596 = vrot.lane.b32.xlu0 %v2095_v54, %s1844_s18  ;;  %s1861_s12 = smov 49   ;;  %s1862_s18 = smov 80  }
 0x142   : > { %600 = vrot.lane.b32.xlu1 %v2095_v54, %s1845_s22  ;;  %476 = vrot.lane.b32.xlu0 %v2095_v54, %s1846_s26  ;;  %s1863_s22 = smov 79   ;;  %s1864_s26 = smov 78  }
 0x146   : > { %480 = vrot.lane.b32.xlu1 %v2095_v54, %s1847_s24  ;;  %484 = vrot.lane.b32.xlu0 %v2095_v54, %s1848_s28  ;;  %s1865_s24 = smov 77   ;;  %s1866_s28 = smov 112  }
 0x14a   : > { %488 = vrot.lane.b32.xlu1 %v2095_v54, %s1849_s29  ;;  %348 = vrot.lane.b32.xlu0 %v2095_v54, %s1850_s6  ;;  %s1867_s29 = smov 111   ;;  %s1868_s6 = smov 110  }
 0x14e   : > { %352 = vrot.lane.b32.xlu1 %v2095_v54, %s1851_s7  ;;  %356 = vrot.lane.b32.xlu0 %v2095_v54, %s1852_s8  ;;  %s1869_s7 = smov 109   ;;  %s1870_s8 = smov 13  }
 0x152   : > { %360 = vrot.lane.b32.xlu1 %v2095_v54, %s1853_s23  ;;  %732 = vrot.lane.b32.xlu0 %v2095_v54, %s1854_s21  ;;  %s1873_s23 = smov 16   ;;  %s1874_s21 = smov 76  }
 0x156   : > { %736 = vrot.lane.b32.xlu1 %v2095_v54, %s1855_s30  ;;  %740 = vrot.lane.b32.xlu0 %v2095_v54, %s1856_s4  ;;  %s1875_s30 = smov 47   ;;  %s1876_s4 = smov 74  }
 0x158   : > { %v433_v57 = vpop.permute.xlu1 %432  ;;  %v429_v58 = vpop.permute.xlu0 %428 }
 0x159   : > { %435 = vst.msk [vmem:[#allocation3 + $0x84] sm:$0xf] %vm301_vm5, %v433_v57  ;;  %431 = vst.msk [vmem:[#allocation3 + $0x80] sm:$0xf] %vm301_vm5, %v429_v58 }
 0x15a   : > { %744 = vrot.lane.b32.xlu1 %v2095_v54, %s1857_s5  ;;  %604 = vrot.lane.b32.xlu0 %v2095_v54, %s1858_s9  ;;  %s1877_s5 = smov 45   ;;  %s1878_s9 = smov 108  }
 0x15c   : > { %v437_v59 = vpop.permute.xlu1 %436  ;;  %v441_v60 = vpop.permute.xlu0 %440 }
 0x15d   : > { %439 = vst.msk [vmem:[#allocation3 + $0x88] sm:$0xf] %vm301_vm5, %v437_v59  ;;  %443 = vst.msk [vmem:[#allocation3 + $0x8c] sm:$0xf] %vm301_vm5, %v441_v60 }
 0x15e   : > { %608 = vrot.lane.b32.xlu1 %v2095_v54, %s1859_s10  ;;  %612 = vrot.lane.b32.xlu0 %v2095_v54, %s1860_s11  ;;  %s1879_s10 = smov 75   ;;  %s1880_s11 = smov 106  }
 0x160   : > { %v305_v61 = vpop.permute.xlu1 %304  ;;  %v309_v62 = vpop.permute.xlu0 %308  ;;  %v913_v1 = vld [vmem:[#allocation3 + $0x80] sm:$0xff] }
 0x161   : > { %307 = vst.msk [vmem:[#allocation3 + $0x4] sm:$0xf] %vm301_vm5, %v305_v61  ;;  %311 = vst.msk [vmem:[#allocation3 + $0x8] sm:$0xf] %vm301_vm5, %v309_v62 }
 0x162   : > { %616 = vrot.lane.b32.xlu1 %v2095_v54, %s1861_s12  ;;  %492 = vrot.lane.b32.xlu0 %v2095_v54, %s1862_s18  ;;  %s1881_s12 = smov 73   ;;  %s1882_s18 = smov 12  }
 0x164   : > { %v313_v63 = vpop.permute.xlu1 %312  ;;  %v685_v0 = vpop.permute.xlu0 %684  ;;  %v914_v2 = vld [vmem:[#allocation3 + $0x88] sm:$0xff] }
 0x165   : > { %315 = vst.msk [vmem:[#allocation3 + $0xc] sm:$0xf] %vm301_vm5, %v313_v63  ;;  %687 = vst.msk [vmem:[#allocation3 + $0x180] sm:$0xf] %vm301_vm5, %v685_v0  ;;  %v1409_v3 = vpack.c.bf16 %v914_v2, %v913_v1 }
 0x166   : > { %496 = vrot.lane.b32.xlu1 %v2095_v54, %s1863_s22  ;;  %500 = vrot.lane.b32.xlu0 %v2095_v54, %s1864_s26  ;;  %s1883_s22 = smov 107   ;;  %s1884_s26 = smov 11  }
 0x167   : > { %1410 = vmatprep.subr.bf16.mxu0 %v1409_v3 }
 0x168   : > { %v689_v4 = vpop.permute.xlu1 %688  ;;  %v693_v5 = vpop.permute.xlu0 %692  ;;  %v897_v8 = vld [vmem:[#allocation3] sm:$0xff] }
 0x169   : > { %691 = vst.msk [vmem:[#allocation3 + $0x184] sm:$0xf] %vm301_vm5, %v689_v4  ;;  %695 = vst.msk [vmem:[#allocation3 + $0x188] sm:$0xf] %vm301_vm5, %v693_v5 }
 0x16a   : > { %504 = vrot.lane.b32.xlu1 %v2095_v54, %s1865_s24  ;;  %364 = vrot.lane.b32.xlu0 %v2095_v54, %s1866_s28  ;;  %s1885_s24 = smov 105   ;;  %s1886_s28 = smov 10  }
 0x16c   : > { %v697_v6 = vpop.permute.xlu1 %696  ;;  %v557_v7 = vpop.permute.xlu0 %556  ;;  %v898_v9 = vld [vmem:[#allocation3 + $0x8] sm:$0xff] }
 0x16d   : > { %699 = vst.msk [vmem:[#allocation3 + $0x18c] sm:$0xf] %vm301_vm5, %v697_v6  ;;  %559 = vst.msk [vmem:[#allocation3 + $0x100] sm:$0xf] %vm301_vm5, %v557_v7  ;;  %v1411_v10 = vpack.c.bf16 %v898_v9, %v897_v8 }
 0x16e   : > { %368 = vrot.lane.b32.xlu1 %v2095_v54, %s1867_s29  ;;  %372 = vrot.lane.b32.xlu0 %v2095_v54, %s1868_s6  ;;  %s1887_s29 = smov 9   ;;  %s1888_s6 = smov 44  }
 0x16f   : > { %1412 = vmatpush3.bf16.msra.mxu0 %v1411_v10 }
 0x170   : > { %v561_v11 = vpop.permute.xlu1 %560  ;;  %v565_v12 = vpop.permute.xlu0 %564  ;;  %v945_v15 = vld [vmem:[#allocation3 + $0x180] sm:$0xff] }
 0x171   : > { %563 = vst.msk [vmem:[#allocation3 + $0x104] sm:$0xf] %vm301_vm5, %v561_v11  ;;  %567 = vst.msk [vmem:[#allocation3 + $0x108] sm:$0xf] %vm301_vm5, %v565_v12 }
 0x172   : > { %376 = vrot.lane.b32.xlu1 %v2095_v54, %s1869_s7  ;;  %753 = vrot.lane.b32.xlu0 %v2095_v54, %s1797_s19  ;;  %s1871_s19 = smov 48   ;;  %s1889_s7 = smov 42  }
 0x174   : > { %v569_v13 = vpop.permute.xlu1 %568  ;;  %v445_v14 = vpop.permute.xlu0 %444  ;;  %v946_v16 = vld [vmem:[#allocation3 + $0x188] sm:$0xff] }
 0x175   : > { %571 = vst.msk [vmem:[#allocation3 + $0x10c] sm:$0xf] %vm301_vm5, %v569_v13  ;;  %447 = vst.msk [vmem:[#allocation3 + $0x90] sm:$0xf] %vm301_vm5, %v445_v14  ;;  %v1441_v17 = vpack.c.bf16 %v946_v16, %v945_v15 }
 0x176   : > { %771 = vrot.lane.b32.xlu1 %v2088_v30, %s1870_s8  ;;  %761 = vrot.lane.b32.xlu0 %v2095_v54, %s1798_s20  ;;  %s1872_s20 = smov 46  }
 0x177   : > { %1442 = vmatprep.subr.bf16.mxu1 %v1441_v17 }
 0x178   : > { %v449_v18 = vpop.permute.xlu1 %448  ;;  %v453_v19 = vpop.permute.xlu0 %452  ;;  %v929_v22 = vld [vmem:[#allocation3 + $0x100] sm:$0xff] }
 0x179   : > { %451 = vst.msk [vmem:[#allocation3 + $0x94] sm:$0xf] %vm301_vm5, %v449_v18  ;;  %455 = vst.msk [vmem:[#allocation3 + $0x98] sm:$0xf] %vm301_vm5, %v453_v19 }
 0x17a   : > { %620 = vrot.lane.b32.xlu1 %v2095_v54, %s1871_s19  ;;  %769 = vrot.lane.b32.xlu0 %v2095_v54, %s1870_s8  ;;  %s1890_s8 = smov 72   ;;  %s1891_s19 = smov 43  }
 0x17c   : > { %v457_v20 = vpop.permute.xlu1 %456  ;;  %v317_v21 = vpop.permute.xlu0 %316  ;;  %v930_v23 = vld [vmem:[#allocation3 + $0x108] sm:$0xff] }
 0x17d   : > { %459 = vst.msk [vmem:[#allocation3 + $0x9c] sm:$0xf] %vm301_vm5, %v457_v20  ;;  %319 = vst.msk [vmem:[#allocation3 + $0x10] sm:$0xf] %vm301_vm5, %v317_v21  ;;  %v1443_v24 = vpack.c.bf16 %v930_v23, %v929_v22 }
 0x17e   : > { %628 = vrot.lane.b32.xlu1 %v2095_v54, %s1872_s20  ;;  %748 = vrot.lane.b32.xlu0 %v2095_v54, %s1873_s23  ;;  %s1892_s20 = smov 70   ;;  %s1893_s23 = smov 41  }
 0x17f   : > { %1444 = vmatpush3.bf16.msra.mxu1 %v1443_v24 }
 0x180   : > { %v321_v25 = vpop.permute.xlu1 %320  ;;  %v325_v26 = vpop.permute.xlu0 %324  ;;  %v915_v29 = vld [vmem:[#allocation3 + $0x90] sm:$0xff] }
 0x181   : > { %323 = vst.msk [vmem:[#allocation3 + $0x14] sm:$0xf] %vm301_vm5, %v321_v25  ;;  %327 = vst.msk [vmem:[#allocation3 + $0x18] sm:$0xf] %vm301_vm5, %v325_v26 }
 0x182   : > { %508 = vrot.lane.b32.xlu1 %v2095_v54, %s1874_s21  ;;  %624 = vrot.lane.b32.xlu0 %v2095_v54, %s1875_s30  ;;  %s1894_s21 = smov 104   ;;  %s1895_s30 = smov 71  }
 0x184   : > { %v329_v27 = vpop.permute.xlu1 %328  ;;  %v701_v28 = vpop.permute.xlu0 %700  ;;  %v916_v31 = vld [vmem:[#allocation3 + $0x98] sm:$0xff] }
 0x185   : > { %331 = vst.msk [vmem:[#allocation3 + $0x1c] sm:$0xf] %vm301_vm5, %v329_v27  ;;  %703 = vst.msk [vmem:[#allocation3 + $0x190] sm:$0xf] %vm301_vm5, %v701_v28  ;;  %v1413_v32 = vpack.c.bf16 %v916_v31, %v915_v29 }
 0x186   : > { %516 = vrot.lane.b32.xlu1 %v2095_v54, %s1876_s4  ;;  %632 = vrot.lane.b32.xlu0 %v2095_v54, %s1877_s5  ;;  %s1896_s4 = smov 102   ;;  %s1897_s5 = smov 69  }
 0x187   : > { %1414 = vmatprep.subr.bf16.mxu0 %v1413_v32 }
 0x188   : > { %v705_v33 = vpop.permute.xlu1 %704  ;;  %v709_v34 = vpop.permute.xlu0 %708  ;;  %v899_v37 = vld [vmem:[#allocation3 + $0x10] sm:$0xff] }
 0x189   : > { %707 = vst.msk [vmem:[#allocation3 + $0x194] sm:$0xf] %vm301_vm5, %v705_v33  ;;  %711 = vst.msk [vmem:[#allocation3 + $0x198] sm:$0xf] %vm301_vm5, %v709_v34 }
 0x18a   : > { %380 = vrot.lane.b32.xlu1 %v2095_v54, %s1878_s9  ;;  %512 = vrot.lane.b32.xlu0 %v2095_v54, %s1879_s10  ;;  %s1898_s9 = smov 8   ;;  %s1899_s10 = smov 103  }
 0x18c   : > { %v713_v35 = vpop.permute.xlu1 %712  ;;  %v573_v36 = vpop.permute.xlu0 %572  ;;  %v900_v38 = vld [vmem:[#allocation3 + $0x18] sm:$0xff] }
 0x18d   : > { %715 = vst.msk [vmem:[#allocation3 + $0x19c] sm:$0xf] %vm301_vm5, %v713_v35  ;;  %575 = vst.msk [vmem:[#allocation3 + $0x110] sm:$0xf] %vm301_vm5, %v573_v36  ;;  %v1415_v39 = vpack.c.bf16 %v900_v38, %v899_v37 }
 0x18e   : > { %388 = vrot.lane.b32.xlu1 %v2095_v54, %s1880_s11  ;;  %520 = vrot.lane.b32.xlu0 %v2095_v54, %s1881_s12  ;;  %s1900_s11 = smov 7   ;;  %s1901_s12 = smov 101  }
 0x18f   : > { %1416 = vmatpush3.bf16.msra.mxu0 %v1415_v39 }
 0x190   : > { %v577_v40 = vpop.permute.xlu1 %576  ;;  %v581_v41 = vpop.permute.xlu0 %580  ;;  %v947_v44 = vld [vmem:[#allocation3 + $0x190] sm:$0xff] }
 0x191   : > { %579 = vst.msk [vmem:[#allocation3 + $0x114] sm:$0xf] %vm301_vm5, %v577_v40  ;;  %583 = vst.msk [vmem:[#allocation3 + $0x118] sm:$0xf] %vm301_vm5, %v581_v41 }
 0x192   : > { %777 = vrot.lane.b32.xlu1 %v2095_v54, %s1882_s18  ;;  %384 = vrot.lane.b32.xlu0 %v2095_v54, %s1883_s22  ;;  %s1903_s22 = smov 5  }
 0x194   : > { %v585_v42 = vpop.permute.xlu1 %584  ;;  %v461_v43 = vpop.permute.xlu0 %460  ;;  %v948_v45 = vld [vmem:[#allocation3 + $0x198] sm:$0xff] }
 0x195   : > { %587 = vst.msk [vmem:[#allocation3 + $0x11c] sm:$0xf] %vm301_vm5, %v585_v42  ;;  %463 = vst.msk [vmem:[#allocation3 + $0xa0] sm:$0xf] %vm301_vm5, %v461_v43  ;;  %v1445_v46 = vpack.c.bf16 %v948_v45, %v947_v44 }
 0x196   : > { %785 = vrot.lane.b32.xlu1 %v2095_v54, %s1884_s26  ;;  %392 = vrot.lane.b32.xlu0 %v2095_v54, %s1885_s24  ;;  %s1905_s24 = smov 38  }
 0x197   : > { %1446 = vmatprep.subr.bf16.mxu1 %v1445_v46 }
 0x198   : > { %v465_v47 = vpop.permute.xlu1 %464  ;;  %v469_v48 = vpop.permute.xlu0 %468  ;;  %v931_v51 = vld [vmem:[#allocation3 + $0x110] sm:$0xff] }
 0x199   : > { %467 = vst.msk [vmem:[#allocation3 + $0xa4] sm:$0xf] %vm301_vm5, %v465_v47  ;;  %471 = vst.msk [vmem:[#allocation3 + $0xa8] sm:$0xf] %vm301_vm5, %v469_v48 }
 0x19a   : > { %793 = vrot.lane.b32.xlu1 %v2095_v54, %s1886_s28  ;;  %779 = vrot.lane.b32.xlu0 %v2088_v30, %s1882_s18  ;;  %s1902_s18 = smov 6  }
 0x19c   : > { %v473_v49 = vpop.permute.xlu1 %472  ;;  %v333_v50 = vpop.permute.xlu0 %332  ;;  %v932_v52 = vld [vmem:[#allocation3 + $0x118] sm:$0xff] }
 0x19d   : > { %475 = vst.msk [vmem:[#allocation3 + $0xac] sm:$0xf] %vm301_vm5, %v473_v49  ;;  %335 = vst.msk [vmem:[#allocation3 + $0x20] sm:$0xf] %vm301_vm5, %v333_v50  ;;  %v1447_v53 = vpack.c.bf16 %v932_v52, %v931_v51 }
 0x19e   : > { %801 = vrot.lane.b32.xlu1 %v2095_v54, %s1887_s29  ;;  %787 = vrot.lane.b32.xlu0 %v2088_v30, %s1884_s26  ;;  %s1904_s26 = smov 40  }
 0x19f   : > { %1448 = vmatpush3.bf16.msra.mxu1 %v1447_v53 }
 0x1a0   : > { %v337_v57 = vpop.permute.xlu1 %336  ;;  %v341_v58 = vpop.permute.xlu0 %340  ;;  %v917_v61 = vld [vmem:[#allocation3 + $0xa0] sm:$0xff] }
 0x1a1   : > { %339 = vst.msk [vmem:[#allocation3 + $0x24] sm:$0xf] %vm301_vm5, %v337_v57  ;;  %343 = vst.msk [vmem:[#allocation3 + $0x28] sm:$0xf] %vm301_vm5, %v341_v58 }
 0x1a2   : > { %636 = vrot.lane.b32.xlu1 %v2095_v54, %s1888_s6  ;;  %795 = vrot.lane.b32.xlu0 %v2088_v30, %s1886_s28  ;;  %s1906_s28 = smov 68   ;;  %s1908_s6 = smov 66  }
 0x1a4   : > { %v345_v59 = vpop.permute.xlu1 %344  ;;  %v717_v60 = vpop.permute.xlu0 %716  ;;  %v918_v62 = vld [vmem:[#allocation3 + $0xa8] sm:$0xff] }
 0x1a5   : > { %347 = vst.msk [vmem:[#allocation3 + $0x2c] sm:$0xf] %vm301_vm5, %v345_v59  ;;  %719 = vst.msk [vmem:[#allocation3 + $0x1a0] sm:$0xf] %vm301_vm5, %v717_v60  ;;  %v1417_v63 = vpack.c.bf16 %v918_v62, %v917_v61 }
 0x1a6   : > { %644 = vrot.lane.b32.xlu1 %v2095_v54, %s1889_s7  ;;  %803 = vrot.lane.b32.xlu0 %v2088_v30, %s1887_s29  ;;  %s1907_s29 = smov 39   ;;  %s1909_s7 = smov 37  }
 0x1a7   : > { %1418 = vmatprep.subr.bf16.mxu0 %v1417_v63 }
 0x1a8   : > { %v721_v0 = vpop.permute.xlu1 %720  ;;  %v725_v1 = vpop.permute.xlu0 %724  ;;  %v901_v4 = vld [vmem:[#allocation3 + $0x20] sm:$0xff] }
 0x1a9   : > { %723 = vst.msk [vmem:[#allocation3 + $0x1a4] sm:$0xf] %vm301_vm5, %v721_v0  ;;  %727 = vst.msk [vmem:[#allocation3 + $0x1a8] sm:$0xf] %vm301_vm5, %v725_v1 }
 0x1aa   : > { %524 = vrot.lane.b32.xlu1 %v2095_v54, %s1890_s8  ;;  %640 = vrot.lane.b32.xlu0 %v2095_v54, %s1891_s19  ;;  %s1910_s8 = smov 100   ;;  %s1911_s19 = smov 67  }
 0x1ac   : > { %v729_v2 = vpop.permute.xlu1 %728  ;;  %v589_v3 = vpop.permute.xlu0 %588  ;;  %v902_v5 = vld [vmem:[#allocation3 + $0x28] sm:$0xff] }
 0x1ad   : > { %731 = vst.msk [vmem:[#allocation3 + $0x1ac] sm:$0xf] %vm301_vm5, %v729_v2  ;;  %591 = vst.msk [vmem:[#allocation3 + $0x120] sm:$0xf] %vm301_vm5, %v589_v3  ;;  %v1419_v6 = vpack.c.bf16 %v902_v5, %v901_v4  ;;  %v874_v5 = vld [vmem:[#allocation6 + $0x8] sm:$0xff] }
 0x1ae   : > { %532 = vrot.lane.b32.xlu1 %v2095_v54, %s1892_s20  ;;  %648 = vrot.lane.b32.xlu0 %v2095_v54, %s1893_s23  ;;  %s1912_s20 = smov 98   ;;  %s1913_s23 = smov 65  }
 0x1af   : > { %1420 = vmatpush3.bf16.msra.mxu0 %v1419_v6  ;;  %1061 = vmatprep.mubr.f32.mxu0 %v874_v5 }
 0x1b0   : > { %v593_v7 = vpop.permute.xlu1 %592  ;;  %v597_v8 = vpop.permute.xlu0 %596  ;;  %v949_v11 = vld [vmem:[#allocation3 + $0x1a0] sm:$0xff] }
 0x1b1   : > { %595 = vst.msk [vmem:[#allocation3 + $0x124] sm:$0xf] %vm301_vm5, %v593_v7  ;;  %599 = vst.msk [vmem:[#allocation3 + $0x128] sm:$0xf] %vm301_vm5, %v597_v8 }
 0x1b2   : > { %396 = vrot.lane.b32.xlu1 %v2095_v54, %s1894_s21  ;;  %528 = vrot.lane.b32.xlu0 %v2095_v54, %s1895_s30  ;;  %s1914_s21 = smov 4   ;;  %s1915_s30 = smov 99  }
 0x1b4   : > { %v601_v9 = vpop.permute.xlu1 %600  ;;  %v477_v10 = vpop.permute.xlu0 %476  ;;  %v950_v12 = vld [vmem:[#allocation3 + $0x1a8] sm:$0xff] }
 0x1b5   : > { %603 = vst.msk [vmem:[#allocation3 + $0x12c] sm:$0xf] %vm301_vm5, %v601_v9  ;;  %479 = vst.msk [vmem:[#allocation3 + $0xb0] sm:$0xf] %vm301_vm5, %v477_v10  ;;  %v1449_v13 = vpack.c.bf16 %v950_v12, %v949_v11 }
 0x1b6   : > { %404 = vrot.lane.b32.xlu1 %v2095_v54, %s1896_s4  ;;  %536 = vrot.lane.b32.xlu0 %v2095_v54, %s1897_s5  ;;  %s1916_s4 = smov 3   ;;  %s1917_s5 = smov 97  }
 0x1b7   : > { %1450 = vmatprep.subr.bf16.mxu1 %v1449_v13 }
 0x1b8   : > { %v481_v14 = vpop.permute.xlu1 %480  ;;  %v485_v15 = vpop.permute.xlu0 %484  ;;  %v933_v18 = vld [vmem:[#allocation3 + $0x120] sm:$0xff] }
 0x1b9   : > { %483 = vst.msk [vmem:[#allocation3 + $0xb4] sm:$0xf] %vm301_vm5, %v481_v14  ;;  %487 = vst.msk [vmem:[#allocation3 + $0xb8] sm:$0xf] %vm301_vm5, %v485_v15  ;;  %v876_v14 = vld [vmem:[#allocation6 + $0x18] sm:$0xff] }
 0x1ba   : > { %809 = vrot.lane.b32.xlu1 %v2095_v54, %s1898_s9  ;;  %400 = vrot.lane.b32.xlu0 %v2095_v54, %s1899_s10  ;;  %s1919_s10 = smov 1  }
 0x1bb   : > { %1156 = vmatprep.mubr.f32.mxu1 %v876_v14 }
 0x1bc   : > { %v489_v16 = vpop.permute.xlu1 %488  ;;  %v349_v17 = vpop.permute.xlu0 %348  ;;  %v934_v19 = vld [vmem:[#allocation3 + $0x128] sm:$0xff] }
 0x1bd   : > { %491 = vst.msk [vmem:[#allocation3 + $0xbc] sm:$0xf] %vm301_vm5, %v489_v16  ;;  %351 = vst.msk [vmem:[#allocation3 + $0x30] sm:$0xf] %vm301_vm5, %v349_v17  ;;  %v1451_v20 = vpack.c.bf16 %v934_v19, %v933_v18 }
 0x1be   : > { %817 = vrot.lane.b32.xlu1 %v2095_v54, %s1900_s11  ;;  %408 = vrot.lane.b32.xlu0 %v2095_v54, %s1901_s12  ;;  %s1921_s12 = smov 34  }
 0x1bf   : > { %1452 = vmatpush3.bf16.msra.mxu1 %v1451_v20 }
 0x1c0   : > { %v353_v21 = vpop.permute.xlu1 %352  ;;  %v357_v22 = vpop.permute.xlu0 %356  ;;  %v919_v25 = vld [vmem:[#allocation3 + $0xb0] sm:$0xff] }
 0x1c1   : > { %355 = vst.msk [vmem:[#allocation3 + $0x34] sm:$0xf] %vm301_vm5, %v353_v21  ;;  %359 = vst.msk [vmem:[#allocation3 + $0x38] sm:$0xf] %vm301_vm5, %v357_v22 }
 0x1c2   : > { %825 = vrot.lane.b32.xlu1 %v2095_v54, %s1902_s18  ;;  %811 = vrot.lane.b32.xlu0 %v2088_v30, %s1898_s9  ;;  %s1918_s9 = smov 2  }
 0x1c4   : > { %v361_v23 = vpop.permute.xlu1 %360  ;;  %v733_v24 = vpop.permute.xlu0 %732  ;;  %v920_v26 = vld [vmem:[#allocation3 + $0xb8] sm:$0xff] }
 0x1c5   : > { %363 = vst.msk [vmem:[#allocation3 + $0x3c] sm:$0xf] %vm301_vm5, %v361_v23  ;;  %735 = vst.msk [vmem:[#allocation3 + $0x1b0] sm:$0xf] %vm301_vm5, %v733_v24  ;;  %v1421_v27 = vpack.c.bf16 %v920_v26, %v919_v25 }
 0x1c6   : > { %833 = vrot.lane.b32.xlu1 %v2095_v54, %s1903_s22  ;;  %819 = vrot.lane.b32.xlu0 %v2088_v30, %s1900_s11  ;;  %s1920_s11 = smov 36  }
 0x1c7   : > { %1422 = vmatprep.subr.bf16.mxu0 %v1421_v27 }
 0x1c8   : > { %v737_v28 = vpop.permute.xlu1 %736  ;;  %v741_v29 = vpop.permute.xlu0 %740  ;;  %v903_v33 = vld [vmem:[#allocation3 + $0x30] sm:$0xff] }
 0x1c9   : > { %739 = vst.msk [vmem:[#allocation3 + $0x1b4] sm:$0xf] %vm301_vm5, %v737_v28  ;;  %743 = vst.msk [vmem:[#allocation3 + $0x1b8] sm:$0xf] %vm301_vm5, %v741_v29 }
 0x1ca   : > { %652 = vrot.lane.b32.xlu1 %v2095_v54, %s1904_s26  ;;  %827 = vrot.lane.b32.xlu0 %v2088_v30, %s1902_s18  ;;  %s1922_s18 = smov 35  }
 0x1cc   : > { %v745_v31 = vpop.permute.xlu1 %744  ;;  %v605_v32 = vpop.permute.xlu0 %604  ;;  %v904_v34 = vld [vmem:[#allocation3 + $0x38] sm:$0xff] }
 0x1cd   : > { %747 = vst.msk [vmem:[#allocation3 + $0x1bc] sm:$0xf] %vm301_vm5, %v745_v31  ;;  %607 = vst.msk [vmem:[#allocation3 + $0x130] sm:$0xf] %vm301_vm5, %v605_v32  ;;  %v1423_v35 = vpack.c.bf16 %v904_v34, %v903_v33 }
 0x1ce   : > { %660 = vrot.lane.b32.xlu1 %v2095_v54, %s1905_s24  ;;  %835 = vrot.lane.b32.xlu0 %v2088_v30, %s1903_s22  ;;  %s1923_s22 = smov 33  }
 0x1cf   : > { %1424 = vmatpush3.bf16.msra.mxu0 %v1423_v35 }
 0x1d0   : > { %v609_v36 = vpop.permute.xlu1 %608  ;;  %v613_v37 = vpop.permute.xlu0 %612  ;;  %v951_v40 = vld [vmem:[#allocation3 + $0x1b0] sm:$0xff] }
 0x1d1   : > { %611 = vst.msk [vmem:[#allocation3 + $0x134] sm:$0xf] %vm301_vm5, %v609_v36  ;;  %615 = vst.msk [vmem:[#allocation3 + $0x138] sm:$0xf] %vm301_vm5, %v613_v37 }
 0x1d2   : > { %540 = vrot.lane.b32.xlu1 %v2095_v54, %s1906_s28  ;;  %656 = vrot.lane.b32.xlu0 %v2095_v54, %s1907_s29 }
 0x1d4   : > { %v617_v38 = vpop.permute.xlu1 %616  ;;  %v493_v39 = vpop.permute.xlu0 %492  ;;  %v952_v41 = vld [vmem:[#allocation3 + $0x1b8] sm:$0xff] }
 0x1d5   : > { %619 = vst.msk [vmem:[#allocation3 + $0x13c] sm:$0xf] %vm301_vm5, %v617_v38  ;;  %495 = vst.msk [vmem:[#allocation3 + $0xc0] sm:$0xf] %vm301_vm5, %v493_v39  ;;  %v1453_v42 = vpack.c.bf16 %v952_v41, %v951_v40  ;;  %v961_v38 = vld [vmem:[%s2428_s2] sm:$0xff]  ;;  %v962_v39 = vld [vmem:[%s2428_s2 + $0x8] sm:$0xff] }
 0x1d6   : > { %548 = vrot.lane.b32.xlu1 %v2095_v54, %s1908_s6  ;;  %664 = vrot.lane.b32.xlu0 %v2095_v54, %s1909_s7  ;;  %v1924_v40 = vmov 0  }
 0x1d7   : > { %1454 = vmatprep.subr.bf16.mxu1 %v1453_v42  ;;  %1673 = vset.pattern.permute.xlu1 %v1924_v40 }
 0x1d8   : > { %v497_v43 = vpop.permute.xlu1 %496  ;;  %v501_v44 = vpop.permute.xlu0 %500  ;;  %v935_v47 = vld [vmem:[#allocation3 + $0x130] sm:$0xff]  ;;  %1674 = vset.pattern.permute.xlu0 %v1924_v40 }
 0x1d9   : > { %499 = vst.msk [vmem:[#allocation3 + $0xc4] sm:$0xf] %vm301_vm5, %v497_v43  ;;  %503 = vst.msk [vmem:[#allocation3 + $0xc8] sm:$0xf] %vm301_vm5, %v501_v44  ;;  %v963_v44 = vld [vmem:[%s2428_s2 + $0x10] sm:$0xff] }
 0x1da   : > { %412 = vrot.lane.b32.xlu1 %v2095_v54, %s1910_s8  ;;  %544 = vrot.lane.b32.xlu0 %v2095_v54, %s1911_s19 }
 0x1dc   : > { %v505_v45 = vpop.permute.xlu1 %504  ;;  %v365_v46 = vpop.permute.xlu0 %364  ;;  %v936_v48 = vld [vmem:[#allocation3 + $0x138] sm:$0xff] }
 0x1dd   : > { %507 = vst.msk [vmem:[#allocation3 + $0xcc] sm:$0xf] %vm301_vm5, %v505_v45  ;;  %367 = vst.msk [vmem:[#allocation3 + $0x40] sm:$0xf] %vm301_vm5, %v365_v46  ;;  %v1455_v49 = vpack.c.bf16 %v936_v48, %v935_v47  ;;  %v965_v45 = vld [vmem:[%s2428_s2 + $0x20] sm:$0xff] }
 0x1de   : > { %420 = vrot.lane.b32.xlu1 %v2095_v54, %s1912_s20  ;;  %552 = vrot.lane.b32.xlu0 %v2095_v54, %s1913_s23 }
 0x1df   : > { %1456 = vmatpush3.bf16.msra.mxu1 %v1455_v49  ;;  %v964_v49 = vld [vmem:[%s2428_s2 + $0x18] sm:$0xff] }
 0x1e0   : > { %v369_v50 = vpop.permute.xlu1 %368  ;;  %v373_v51 = vpop.permute.xlu0 %372  ;;  %v921_v57 = vld [vmem:[#allocation3 + $0xc0] sm:$0xff] }
 0x1e1   : > { %371 = vst.msk [vmem:[#allocation3 + $0x44] sm:$0xf] %vm301_vm5, %v369_v50  ;;  %375 = vst.msk [vmem:[#allocation3 + $0x48] sm:$0xf] %vm301_vm5, %v373_v51 }
 0x1e2   : > { %841 = vrot.lane.b32.xlu1 %v2095_v54, %s1914_s21  ;;  %416 = vrot.lane.b32.xlu0 %v2095_v54, %s1915_s30 }
 0x1e4   : > { %v377_v52 = vpop.permute.xlu1 %376  ;;  %v754_v53 = vpop.permute.xlu0 %753  ;;  %v922_v58 = vld [vmem:[#allocation3 + $0xc8] sm:$0xff] }
 0x1e5   : > { %379 = vst.msk [vmem:[#allocation3 + $0x4c] sm:$0xf] %vm301_vm5, %v377_v52  ;;  %v758_v59 = vsel %vm757_vm6, %v754_v53, %v2152_v55  ;;  %v1425_v60 = vpack.c.bf16 %v922_v58, %v921_v57  ;;  %v966_v52 = vld [vmem:[%s2428_s2 + $0x28] sm:$0xff]  ;;  %vm869_vm6 = vcmask 7168  }
 0x1e6   : > { %760 = vst.msk [vmem:[#allocation3 + $0x1c4] sm:$0xf] %vm301_vm5, %v758_v59  ;;  %849 = vrot.lane.b32.xlu1 %v2095_v54, %s1916_s4  ;;  %424 = vrot.lane.b32.xlu0 %v2095_v54, %s1917_s5 }
 0x1e7   : > { %1426 = vmatprep.subr.bf16.mxu0 %v1425_v60 }
 0x1e8   : > { %v772_v61 = vpop.permute.xlu1 %771  ;;  %v762_v62 = vpop.permute.xlu0 %761  ;;  %v905_v1 = vld [vmem:[#allocation3 + $0x40] sm:$0xff] }
 0x1e9   : > { %v766_v63 = vsel %vm765_vm7, %v762_v62, %v2158_v56  ;;  %v1675_v56 = vld [vmem:[#allocation2 + $0x4] sm:$0xf] }
 0x1ea   : > { %768 = vst.msk [vmem:[#allocation3 + $0x1c8] sm:$0xf] %vm301_vm5, %v766_v63  ;;  %857 = vrot.lane.b32.xlu1 %v2095_v54, %s1918_s9  ;;  %843 = vrot.lane.b32.xlu0 %v2088_v30, %s1914_s21 }
 0x1ec   : > { %v621_v55 = vpop.permute.xlu1 %620  ;;  %v770_v0 = vpop.permute.xlu0 %769  ;;  %v906_v2 = vld [vmem:[#allocation3 + $0x48] sm:$0xff] }
 0x1ed   : > { %623 = vst.msk [vmem:[#allocation3 + $0x140] sm:$0xf] %vm301_vm5, %v621_v55  ;;  %v774_v3 = vsel %vm773_vm8, %v770_v0, %v772_v61  ;;  %v1427_v4 = vpack.c.bf16 %v906_v2, %v905_v1 }
 0x1ee   : > { %776 = vst.msk [vmem:[#allocation3 + $0x1cc] sm:$0xf] %vm301_vm5, %v774_v3  ;;  %865 = vrot.lane.b32.xlu1 %v2095_v54, %s1919_s10  ;;  %851 = vrot.lane.b32.xlu0 %v1675_v56, %s1916_s4  ;;  %s1473_s4 = smul.u32 48, %s2450_s15 }
 0x1ef   : > { %1428 = vmatpush3.bf16.msra.mxu0 %v1427_v4 }
 0x1f0   : > { %v629_v30 = vpop.permute.xlu1 %628  ;;  %v749_v6 = vpop.permute.xlu0 %748 }
 0x1f1   : > { %631 = vst.msk [vmem:[#allocation3 + $0x148] sm:$0xf] %vm301_vm5, %v629_v30  ;;  %751 = vst.msk [vmem:[#allocation3 + $0x1c0] sm:$0xf] %vm301_vm5, %v749_v6 }
 0x1f2   : > { %668 = vrot.lane.b32.xlu1 %v2095_v54, %s1920_s11  ;;  %859 = vrot.lane.b32.xlu0 %v1675_v56, %s1918_s9 }
 0x1f4   : > { %v509_v7 = vpop.permute.xlu1 %508  ;;  %v625_v8 = vpop.permute.xlu0 %624 }
 0x1f5   : > { %511 = vst.msk [vmem:[#allocation3 + $0xd0] sm:$0xf] %vm301_vm5, %v509_v7  ;;  %627 = vst.msk [vmem:[#allocation3 + $0x144] sm:$0xf] %vm301_vm5, %v625_v8  ;;  %v954_v12 = vld [vmem:[#allocation3 + $0x1c8] sm:$0xff] }
 0x1f6   : > { %676 = vrot.lane.b32.xlu1 %v2095_v54, %s1921_s12  ;;  %867 = vrot.lane.b32.xlu0 %v1675_v56, %s1919_s10  ;;  %s2395_s10 = scalar_lea.vmem %s2429_s3, %s1473_s4 }
 0x1f8   : > { %v517_v9 = vpop.permute.xlu1 %516  ;;  %v633_v10 = vpop.permute.xlu0 %632  ;;  %v953_v11 = vld [vmem:[#allocation3 + $0x1c0] sm:$0xff] }
 0x1f9   : > { %519 = vst.msk [vmem:[#allocation3 + $0xd8] sm:$0xf] %vm301_vm5, %v517_v9  ;;  %635 = vst.msk [vmem:[#allocation3 + $0x14c] sm:$0xf] %vm301_vm5, %v633_v10  ;;  %v1457_v13 = vpack.c.bf16 %v954_v12, %v953_v11 }
 0x1fa   : > { %672 = vrot.lane.b32.xlu0 %v2095_v54, %s1922_s18  ;;  %969 = vperm.xlu1 %1673, %v961_v38  }
 0x1fb   : > { %1458 = vmatprep.subr.bf16.mxu1 %v1457_v13 }
 0x1fc   : > { %v381_v15 = vpop.permute.xlu1 %380  ;;  %v513_v16 = vpop.permute.xlu0 %512  ;;  %v937_v19 = vld [vmem:[#allocation3 + $0x140] sm:$0xff] }
 0x1fd   : > { %383 = vst.msk [vmem:[#allocation3 + $0x50] sm:$0xf] %vm301_vm5, %v381_v15  ;;  %515 = vst.msk [vmem:[#allocation3 + $0xd4] sm:$0xf] %vm301_vm5, %v513_v16 }
 0x1fe   : > { %680 = vrot.lane.b32.xlu0 %v2095_v54, %s1923_s22  ;;  %979 = vperm.xlu1 %1673, %v963_v44  }
 0x200   : > { %v389_v17 = vpop.permute.xlu1 %388  ;;  %v521_v18 = vpop.permute.xlu0 %520  ;;  %v938_v20 = vld [vmem:[#allocation3 + $0x148] sm:$0xff] }
 0x201   : > { %391 = vst.msk [vmem:[#allocation3 + $0x58] sm:$0xf] %vm301_vm5, %v389_v17  ;;  %523 = vst.msk [vmem:[#allocation3 + $0xdc] sm:$0xf] %vm301_vm5, %v521_v18  ;;  %v1459_v21 = vpack.c.bf16 %v938_v20, %v937_v19 }
 0x202   : > { %974 = vperm.xlu0 %1674, %v962_v39   ;;  %984 = vperm.xlu1 %1673, %v964_v49  }
 0x203   : > { %1460 = vmatpush3.bf16.msra.mxu1 %v1459_v21 }
 0x204   : > { %v778_v22 = vpop.permute.xlu1 %777  ;;  %v385_v23 = vpop.permute.xlu0 %384  ;;  %v923_v26 = vld [vmem:[#allocation3 + $0xd0] sm:$0xff] }
 0x205   : > { %387 = vst.msk [vmem:[#allocation3 + $0x54] sm:$0xf] %vm301_vm5, %v385_v23 }
 0x206   : > { %989 = vperm.xlu0 %1674, %v965_v45   ;;  %994 = vperm.xlu1 %1673, %v966_v52  }
 0x208   : > { %v786_v24 = vpop.permute.xlu1 %785  ;;  %v393_v25 = vpop.permute.xlu0 %392  ;;  %v924_v27 = vld [vmem:[#allocation3 + $0xd8] sm:$0xff] }
 0x209   : > { %395 = vst.msk [vmem:[#allocation3 + $0x5c] sm:$0xf] %vm301_vm5, %v393_v25  ;;  %v1429_v54 = vpack.c.bf16 %v924_v27, %v923_v26 }
 0x20b   : > { %1430 = vmatprep.subr.bf16.mxu0 %v1429_v54 }
 0x20c   : > { %v794_v28 = vpop.permute.xlu1 %793  ;;  %v780_v29 = vpop.permute.xlu0 %779  ;;  %v907_v34 = vld [vmem:[#allocation3 + $0x50] sm:$0xff] }
 0x20d   : > { %v782_v31 = vsel %vm781_vm9, %v778_v22, %v780_v29 }
 0x20e   : > { %784 = vst.msk [vmem:[#allocation3 + $0x1d0] sm:$0xf] %vm301_vm5, %v782_v31 }
 0x210   : > { %v802_v32 = vpop.permute.xlu1 %801  ;;  %v788_v33 = vpop.permute.xlu0 %787  ;;  %v908_v35 = vld [vmem:[#allocation3 + $0x58] sm:$0xff] }
 0x211   : > { %v790_v36 = vsel %vm789_vm10, %v786_v24, %v788_v33  ;;  %v1431_v37 = vpack.c.bf16 %v908_v35, %v907_v34 }
 0x212   : > { %792 = vst.msk [vmem:[#allocation3 + $0x1d4] sm:$0xf] %vm301_vm5, %v790_v36 }
 0x213   : > { %1432 = vmatpush3.bf16.msra.mxu0 %v1431_v37 }
 0x214   : > { %v637_v41 = vpop.permute.xlu1 %636  ;;  %v796_v42 = vpop.permute.xlu0 %795 }
 0x215   : > { %639 = vst.msk [vmem:[#allocation3 + $0x150] sm:$0xf] %vm301_vm5, %v637_v41  ;;  %v798_v43 = vsel %vm797_vm11, %v794_v28, %v796_v42 }
 0x216   : > { %800 = vst.msk [vmem:[#allocation3 + $0x1d8] sm:$0xf] %vm301_vm5, %v798_v43 }
 0x218   : > { %v645_v46 = vpop.permute.xlu1 %644  ;;  %v804_v47 = vpop.permute.xlu0 %803 }
 0x219   : > { %647 = vst.msk [vmem:[#allocation3 + $0x158] sm:$0xf] %vm301_vm5, %v645_v46  ;;  %v806_v48 = vsel %vm805_vm12, %v802_v32, %v804_v47  ;;  %v955_v58 = vld [vmem:[#allocation3 + $0x1d0] sm:$0xff] }
 0x21a   : > { %808 = vst.msk [vmem:[#allocation3 + $0x1dc] sm:$0xf] %vm301_vm5, %v806_v48 }
 0x21c   : > { %v525_v50 = vpop.permute.xlu1 %524  ;;  %v641_v51 = vpop.permute.xlu0 %640 }
 0x21d   : > { %527 = vst.msk [vmem:[#allocation3 + $0xe0] sm:$0xf] %vm301_vm5, %v525_v50  ;;  %643 = vst.msk [vmem:[#allocation3 + $0x154] sm:$0xf] %vm301_vm5, %v641_v51 }
 0x220   : > { %v533_v53 = vpop.permute.xlu1 %532  ;;  %v649_v57 = vpop.permute.xlu0 %648 }
 0x221   : > { %535 = vst.msk [vmem:[#allocation3 + $0xe8] sm:$0xf] %vm301_vm5, %v533_v53  ;;  %651 = vst.msk [vmem:[#allocation3 + $0x15c] sm:$0xf] %vm301_vm5, %v649_v57  ;;  %v956_v59 = vld [vmem:[#allocation3 + $0x1d8] sm:$0xff]  ;;  %v873_v53 = vld [vmem:[#allocation6] sm:$0xff] }
 0x222   : > { %v1461_v60 = vpack.c.bf16 %v956_v59, %v955_v58  ;;  %v878_v59 = vld [vmem:[#allocation6 + $0x28] sm:$0xff] }
 0x224   : > { %v397_v61 = vpop.permute.xlu1 %396  ;;  %1462 = vmatprep.subr.bf16.mxu1 %v1461_v60  ;;  %v529_v62 = vpop.permute.xlu0 %528  ;;  %v939_v0 = vld [vmem:[#allocation3 + $0x150] sm:$0xff] }
 0x225   : > { %399 = vst.msk [vmem:[#allocation3 + $0x60] sm:$0xf] %vm301_vm5, %v397_v61  ;;  %531 = vst.msk [vmem:[#allocation3 + $0xe4] sm:$0xf] %vm301_vm5, %v529_v62  ;;  %v877_v61 = vld [vmem:[#allocation6 + $0x20] sm:$0xff] }
 0x228   : > { %v405_v63 = vpop.permute.xlu1 %404  ;;  %v537_v55 = vpop.permute.xlu0 %536  ;;  %v940_v1 = vld [vmem:[#allocation3 + $0x158] sm:$0xff] }
 0x229   : > { %407 = vst.msk [vmem:[#allocation3 + $0x68] sm:$0xf] %vm301_vm5, %v405_v63  ;;  %539 = vst.msk [vmem:[#allocation3 + $0xec] sm:$0xf] %vm301_vm5, %v537_v55  ;;  %v1463_v2 = vpack.c.bf16 %v940_v1, %v939_v0  ;;  %v882_v55 = vld [vmem:[#allocation6 + $0x48] sm:$0xff]  ;;  %v881_v1 = vld [vmem:[#allocation6 + $0x40] sm:$0xff] }
 0x22b   : > { %1464 = vmatpush3.bf16.msra.mxu1 %v1463_v2 }
 0x22c   : > { %v810_v3 = vpop.permute.xlu1 %809  ;;  %v401_v4 = vpop.permute.xlu0 %400  ;;  %v925_v30 = vld [vmem:[#allocation3 + $0xe0] sm:$0xff] }
 0x22d   : > { %403 = vst.msk [vmem:[#allocation3 + $0x64] sm:$0xf] %vm301_vm5, %v401_v4  ;;  %v885_v4 = vld [vmem:[#allocation6 + $0x60] sm:$0xff] }
 0x230   : > { %v818_v5 = vpop.permute.xlu1 %817  ;;  %v409_v56 = vpop.permute.xlu0 %408  ;;  %v926_v6 = vld [vmem:[#allocation3 + $0xe8] sm:$0xff] }
 0x231   : > { %411 = vst.msk [vmem:[#allocation3 + $0x6c] sm:$0xf] %vm301_vm5, %v409_v56  ;;  %v1433_v7 = vpack.c.bf16 %v926_v6, %v925_v30  ;;  %v890_v56 = vld [vmem:[#allocation6 + $0x88] sm:$0xff] }
 0x233   : > { %1434 = vmatprep.subr.bf16.mxu0 %v1433_v7 }
 0x234   : > { %v826_v8 = vpop.permute.xlu1 %825  ;;  %v812_v9 = vpop.permute.xlu0 %811  ;;  %v909_v13 = vld [vmem:[#allocation3 + $0x60] sm:$0xff] }
 0x235   : > { %v814_v10 = vsel %vm813_vm13, %v810_v3, %v812_v9  ;;  %v886_v3 = vld [vmem:[#allocation6 + $0x68] sm:$0xff] }
 0x236   : > { %816 = vst.msk [vmem:[#allocation3 + $0x1e0] sm:$0xf] %vm301_vm5, %v814_v10  ;;  %v894_v9 = vld [vmem:[#allocation6 + $0xa8] sm:$0xff]  ;;  %v893_v10 = vld [vmem:[#allocation6 + $0xa0] sm:$0xff] }
 0x238   : > { %v834_v11 = vpop.permute.xlu1 %833  ;;  %v820_v12 = vpop.permute.xlu0 %819  ;;  %v910_v14 = vld [vmem:[#allocation3 + $0x68] sm:$0xff] }
 0x239   : > { %v822_v15 = vsel %vm821_vm14, %v818_v5, %v820_v12  ;;  %v1435_v16 = vpack.c.bf16 %v910_v14, %v909_v13  ;;  %v875_v14 = vld [vmem:[#allocation6 + $0x10] sm:$0xff] }
 0x23a   : > { %824 = vst.msk [vmem:[#allocation3 + $0x1e4] sm:$0xf] %vm301_vm5, %v822_v15  ;;  %v880_v15 = vld [vmem:[#allocation6 + $0x38] sm:$0xff] }
 0x23b   : > { %1436 = vmatpush3.bf16.msra.mxu0 %v1435_v16  ;;  %v879_v16 = vld [vmem:[#allocation6 + $0x30] sm:$0xff] }
 0x23c   : > { %v653_v17 = vpop.permute.xlu1 %652  ;;  %v828_v18 = vpop.permute.xlu0 %827 }
 0x23d   : > { %655 = vst.msk [vmem:[#allocation3 + $0x160] sm:$0xf] %vm301_vm5, %v653_v17  ;;  %v830_v19 = vsel %vm829_vm15, %v826_v8, %v828_v18  ;;  %v889_v8 = vld [vmem:[#allocation6 + $0x80] sm:$0xff]  ;;  %v884_v17 = vld [vmem:[#allocation6 + $0x58] sm:$0xff]  ;;  %v883_v18 = vld [vmem:[#allocation6 + $0x50] sm:$0xff] }
 0x23e   : > { %832 = vst.msk [vmem:[#allocation3 + $0x1e8] sm:$0xf] %vm301_vm5, %v830_v19  ;;  %v888_v19 = vld [vmem:[#allocation6 + $0x78] sm:$0xff] }
 0x240   : > { %v661_v20 = vpop.permute.xlu1 %660  ;;  %v836_v21 = vpop.permute.xlu0 %835 }
 0x241   : > { %663 = vst.msk [vmem:[#allocation3 + $0x168] sm:$0xf] %vm301_vm5, %v661_v20  ;;  %v838_v22 = vsel %vm837_vm1, %v834_v11, %v836_v21  ;;  %v957_v27 = vld [vmem:[#allocation3 + $0x1e0] sm:$0xff]  ;;  %v887_v20 = vld [vmem:[#allocation6 + $0x70] sm:$0xff]  ;;  %v892_v21 = vld [vmem:[#allocation6 + $0x98] sm:$0xff] }
 0x242   : > { %840 = vst.msk [vmem:[#allocation3 + $0x1ec] sm:$0xf] %vm301_vm5, %v838_v22  ;;  %v891_v22 = vld [vmem:[#allocation6 + $0x90] sm:$0xff] }
 0x244   : > { %v541_v23 = vpop.permute.xlu1 %540  ;;  %v657_v24 = vpop.permute.xlu0 %656 }
 0x245   : > { %543 = vst.msk [vmem:[#allocation3 + $0xf0] sm:$0xf] %vm301_vm5, %v541_v23  ;;  %659 = vst.msk [vmem:[#allocation3 + $0x164] sm:$0xf] %vm301_vm5, %v657_v24  ;;  %v896_v23 = vld [vmem:[#allocation6 + $0xb8] sm:$0xff]  ;;  %v895_v24 = vld [vmem:[#allocation6 + $0xb0] sm:$0xff] }
 0x248   : > { %v549_v25 = vpop.permute.xlu1 %548  ;;  %v665_v26 = vpop.permute.xlu0 %664 }
 0x249   : > { %551 = vst.msk [vmem:[#allocation3 + $0xf8] sm:$0xf] %vm301_vm5, %v549_v25  ;;  %667 = vst.msk [vmem:[#allocation3 + $0x16c] sm:$0xf] %vm301_vm5, %v665_v26  ;;  %v958_v54 = vld [vmem:[#allocation3 + $0x1e8] sm:$0xff] }
 0x24a   : > { %v1465_v28 = vpack.c.bf16 %v958_v54, %v957_v27 }
 0x24c   : > { %v413_v29 = vpop.permute.xlu1 %412  ;;  %1466 = vmatprep.subr.bf16.mxu1 %v1465_v28  ;;  %v545_v31 = vpop.permute.xlu0 %544  ;;  %v941_v34 = vld [vmem:[#allocation3 + $0x160] sm:$0xff] }
 0x24d   : > { %415 = vst.msk [vmem:[#allocation3 + $0x70] sm:$0xf] %vm301_vm5, %v413_v29  ;;  %547 = vst.msk [vmem:[#allocation3 + $0xf4] sm:$0xf] %vm301_vm5, %v545_v31 }
 0x250   : > { %v421_v32 = vpop.permute.xlu1 %420  ;;  %v553_v33 = vpop.permute.xlu0 %552  ;;  %v942_v35 = vld [vmem:[#allocation3 + $0x168] sm:$0xff] }
 0x251   : > { %423 = vst.msk [vmem:[#allocation3 + $0x78] sm:$0xf] %vm301_vm5, %v421_v32  ;;  %555 = vst.msk [vmem:[#allocation3 + $0xfc] sm:$0xf] %vm301_vm5, %v553_v33  ;;  %v1467_v36 = vpack.c.bf16 %v942_v35, %v941_v34 }
 0x253   : > { %1468 = vmatpush3.bf16.msra.mxu1 %v1467_v36 }
 0x254   : > { %v842_v37 = vpop.permute.xlu1 %841  ;;  %v417_v38 = vpop.permute.xlu0 %416  ;;  %v927_v41 = vld [vmem:[#allocation3 + $0xf0] sm:$0xff] }
 0x255   : > { %419 = vst.msk [vmem:[#allocation3 + $0x74] sm:$0xf] %vm301_vm5, %v417_v38 }
 0x258   : > { %v850_v39 = vpop.permute.xlu1 %849  ;;  %v425_v40 = vpop.permute.xlu0 %424  ;;  %v928_v42 = vld [vmem:[#allocation3 + $0xf8] sm:$0xff] }
 0x259   : > { %427 = vst.msk [vmem:[#allocation3 + $0x7c] sm:$0xf] %vm301_vm5, %v425_v40  ;;  %v1437_v43 = vpack.c.bf16 %v928_v42, %v927_v41 }
 0x25b   : > { %1438 = vmatprep.subr.bf16.mxu0 %v1437_v43 }
 0x25c   : > { %v858_v44 = vpop.permute.xlu1 %857  ;;  %v844_v45 = vpop.permute.xlu0 %843  ;;  %v911_v49 = vld [vmem:[#allocation3 + $0x70] sm:$0xff] }
 0x25d   : > { %v846_v46 = vsel %vm845_vm2, %v842_v37, %v844_v45 }
 0x25e   : > { %848 = vst.msk [vmem:[#allocation3 + $0x1f0] sm:$0xf] %vm301_vm5, %v846_v46 }
 0x260   : > { %v866_v47 = vpop.permute.xlu1 %865  ;;  %v852_v48 = vpop.permute.xlu0 %851  ;;  %v912_v50 = vld [vmem:[#allocation3 + $0x78] sm:$0xff] }
 0x261   : > { %v854_v51 = vsel %vm853_vm3, %v850_v39, %v852_v48  ;;  %v1439_v52 = vpack.c.bf16 %v912_v50, %v911_v49 }
 0x262   : > { %856 = vst.msk [vmem:[#allocation3 + $0x1f4] sm:$0xf] %vm301_vm5, %v854_v51 }
 0x263   : > { %1440 = vmatpush3.bf16.msra.mxu0 %v1439_v52 }
 0x264   : > { %v669_v57 = vpop.permute.xlu1 %668  ;;  %v860_v58 = vpop.permute.xlu0 %859 }
 0x265   : > { %671 = vst.msk [vmem:[#allocation3 + $0x170] sm:$0xf] %vm301_vm5, %v669_v57  ;;  %v862_v60 = vsel %vm861_vm4, %v858_v44, %v860_v58 }
 0x266   : > { %864 = vst.msk [vmem:[#allocation3 + $0x1f8] sm:$0xf] %vm301_vm5, %v862_v60  ;;  %1062 = vmatmul.mubr.f32.vlgmr.msra.gmra.mrb[0].mxu0 %v873_v53 }
 0x267   : > { %1066 = vmatprep.mubr.f32.mxu0 %v878_v59 }
 0x268   : > { %v677_v62 = vpop.permute.xlu1 %676  ;;  %v868_v63 = vpop.permute.xlu0 %867 }
 0x269   : > { %679 = vst.msk [vmem:[#allocation3 + $0x178] sm:$0xf] %vm301_vm5, %v677_v62  ;;  %v870_v0 = vsel %vm869_vm6, %v866_v47, %v868_v63  ;;  %v959_v30 = vld [vmem:[#allocation3 + $0x1f0] sm:$0xff] }
 0x26a   : > { %872 = vst.msk [vmem:[#allocation3 + $0x1fc] sm:$0xf] %vm301_vm5, %v870_v0  ;;  %1067 = vmatmul.mubr.f32.gmra.mrb[2].mxu0 %v877_v61 }
 0x26b   : > { %1071 = vmatprep.mubr.f32.mxu0 %v882_v55 }
 0x26c   : > { %v673_v2 = vpop.permute.xlu0 %672 }
 0x26d   : > { %675 = vst.msk [vmem:[#allocation3 + $0x174] sm:$0xf] %vm301_vm5, %v673_v2 }
 0x26e   : > { %1072 = vmatmul.mubr.f32.gmra.mrb[4].mxu0 %v881_v1 }
 0x26f   : > { %1076 = vmatprep.mubr.f32.mxu0 %v886_v3 }
 0x270   : > { %v681_v5 = vpop.permute.xlu0 %680 }
 0x271   : > { %683 = vst.msk [vmem:[#allocation3 + $0x17c] sm:$0xf] %vm301_vm5, %v681_v5  ;;  %v960_v6 = vld [vmem:[#allocation3 + $0x1f8] sm:$0xff]  ;;  %vm1193_vm5 = vcmask 123904  }
 0x272   : > { %v1469_v7 = vpack.c.bf16 %v960_v6, %v959_v30  ;;  %1077 = vmatmul.mubr.f32.gmra.mrb[6].mxu0 %v885_v4 }
 0x273   : > { %1081 = vmatprep.mubr.f32.mxu0 %v890_v56 }
 0x274   : > { %1470 = vmatprep.subr.bf16.mxu1 %v1469_v7  ;;  %v943_v11 = vld [vmem:[#allocation3 + $0x170] sm:$0xff] }
 0x276   : > { %1082 = vmatmul.mubr.f32.gmra.mrb[8].mxu0 %v889_v8 }
 0x277   : > { %1086 = vmatprep.mubr.f32.mxu0 %v894_v9 }
 0x278   : > { %v944_v12 = vld [vmem:[#allocation3 + $0x178] sm:$0xff] }
 0x279   : > { %v1471_v13 = vpack.c.bf16 %v944_v12, %v943_v11  ;;  %v970_v43 = vpop.permute.xlu1 %969 }
 0x27a   : > { %1087 = vmatmul.mubr.f32.gmra.mrb[10].mxu0 %v893_v10 }
 0x27b   : > { %1472 = vmatpush3.bf16.msra.mxu1 %v1471_v13 }
 0x27d   : > { %v980_v53 = vpop.permute.xlu1 %979 }
 0x27e   : > { %1157 = vmatmul.mubr.f32.vlgmr.msra.gmra.mrb[0].mxu1 %v875_v14 }
 0x27f   : > { %1161 = vmatprep.mubr.f32.mxu1 %v880_v15 }
 0x281   : > { %v975_v47 = vpop.permute.xlu0 %974  ;;  %v985_v63 = vpop.permute.xlu1 %984 }
 0x282   : > { %1162 = vmatmul.mubr.f32.gmra.mrb[2].mxu1 %v879_v16 }
 0x283   : > { %1166 = vmatprep.mubr.f32.mxu1 %v884_v17 }
 0x285   : > { %v990_v2 = vpop.permute.xlu0 %989  ;;  %v995_v8 = vpop.permute.xlu1 %994 }
 0x286   : > { %1167 = vmatmul.mubr.f32.gmra.mrb[4].mxu1 %v883_v18 }
 0x287   : > { %1171 = vmatprep.mubr.f32.mxu1 %v888_v19 }
 0x28a   : > { %1172 = vmatmul.mubr.f32.gmra.mrb[6].mxu1 %v887_v20 }
 0x28b   : > { %1176 = vmatprep.mubr.f32.mxu1 %v892_v21 }
 0x28e   : > { %1177 = vmatmul.mubr.f32.gmra.mrb[8].mxu1 %v891_v22 }
 0x28f   : > { %1181 = vmatprep.mubr.f32.mxu1 %v896_v23 }
 0x292   : > { %1182 = vmatmul.mubr.f32.gmra.mrb[10].mxu1 %v895_v24 }
 0x339   : > { %v1341_v25 = vpop.f32.mrb[0].mxu0 }
 0x33a   : > { %v1342_v26 = vpop.f32.mrb[1].mxu0 }
 0x33b   : > { %v1343_v27 = vadd.f32 %v1342_v26, %v1341_v25 }
 0x33d   : > { %v1344_v54 = vpop.f32.mrb[2].mxu0  ;;  %v1064_v44 = vadd.f32 %v1343_v27, %v970_v43 }
 0x33e   : > { %v1345_v28 = vpop.f32.mrb[3].mxu0 }
 0x33f   : > { %v1346_v29 = vadd.f32 %v1345_v28, %v1344_v54 }
 0x341   : > { %v1347_v31 = vpop.f32.mrb[4].mxu0  ;;  %v1069_v51 = vadd.f32 %v1346_v29, %v975_v47 }
 0x342   : > { %v1348_v32 = vpop.f32.mrb[5].mxu0 }
 0x343   : > { %v1349_v33 = vadd.f32 %v1348_v32, %v1347_v31 }
 0x345   : > { %v1350_v34 = vpop.f32.mrb[6].mxu0  ;;  %v1074_v58 = vadd.f32 %v1349_v33, %v980_v53 }
 0x346   : > { %v1351_v35 = vpop.f32.mrb[7].mxu0 }
 0x347   : > { %v1352_v36 = vadd.f32 %v1351_v35, %v1350_v34 }
 0x349   : > { %v1353_v37 = vpop.f32.mrb[8].mxu0  ;;  %v1079_v3 = vadd.f32 %v1352_v36, %v985_v63 }
 0x34a   : > { %v1354_v38 = vpop.f32.mrb[9].mxu0 }
 0x34b   : > { %v1355_v39 = vadd.f32 %v1354_v38, %v1353_v37 }
 0x34d   : > { %v1356_v40 = vpop.f32.mrb[10].mxu0  ;;  %v1084_v30 = vadd.f32 %v1355_v39, %v990_v2 }
 0x34e   : > { %v1357_v41 = vpop.f32.mrb[11].mxu0 }
 0x34f   : > { %v1358_v42 = vadd.f32 %v1357_v41, %v1356_v40 }
 0x351   : > { %v1391_v45 = vpop.f32.mrb[0].mxu1  ;;  %v1089_v12 = vadd.f32 %v1358_v42, %v995_v8 }
 0x352   : > { %v1392_v46 = vpop.f32.mrb[1].mxu1 }
 0x353   : > { %v1393_v48 = vadd.f32 %v1392_v46, %v1391_v45 }
 0x355   : > { %v1159_v49 = vadd.f32 %v1393_v48, %v1064_v44  ;;  %v1394_v50 = vpop.f32.mrb[2].mxu1 }
 0x356   : > { %v1395_v52 = vpop.f32.mrb[3].mxu1 }
 0x357   : > { %1188 = vst.msk [vmem:[%s2395_s10] sm:$0xff] %vm241_vm0, %v1159_v49  ;;  %v1396_v57 = vadd.f32 %v1395_v52, %v1394_v50 }
 0x359   : > { %v1164_v59 = vadd.f32 %v1396_v57, %v1069_v51  ;;  %v1397_v60 = vpop.f32.mrb[4].mxu1 }
 0x35a   : > { %v1398_v61 = vpop.f32.mrb[5].mxu1 }
 0x35b   : > { %1189 = vst.msk [vmem:[%s2395_s10 + $0x8] sm:$0xff] %vm241_vm0, %v1164_v59  ;;  %v1399_v62 = vadd.f32 %v1398_v61, %v1397_v60 }
 0x35d   : > { %v1169_v55 = vadd.f32 %v1399_v62, %v1074_v58  ;;  %v1400_v0 = vpop.f32.mrb[6].mxu1 }
 0x35e   : > { %v1401_v1 = vpop.f32.mrb[7].mxu1 }
 0x35f   : > { %1190 = vst.msk [vmem:[%s2395_s10 + $0x10] sm:$0xff] %vm241_vm0, %v1169_v55  ;;  %v1402_v4 = vadd.f32 %v1401_v1, %v1400_v0 }
 0x361   : > { %v1174_v5 = vadd.f32 %v1402_v4, %v1079_v3  ;;  %v1403_v56 = vpop.f32.mrb[8].mxu1 }
 0x362   : > { %v1404_v6 = vpop.f32.mrb[9].mxu1 }
 0x363   : > { %1191 = vst.msk [vmem:[%s2395_s10 + $0x18] sm:$0xff] %vm241_vm0, %v1174_v5  ;;  %v1405_v7 = vadd.f32 %v1404_v6, %v1403_v56 }
 0x365   : > { %v1179_v9 = vadd.f32 %v1405_v7, %v1084_v30  ;;  %v1406_v10 = vpop.f32.mrb[10].mxu1 }
 0x366   : > { %v1407_v11 = vpop.f32.mrb[11].mxu1 }
 0x367   : > { %1192 = vst.msk [vmem:[%s2395_s10 + $0x20] sm:$0xff] %vm241_vm0, %v1179_v9  ;;  %v1408_v13 = vadd.f32 %v1407_v11, %v1406_v10 }
 0x369   : > { %v1184_v14 = vadd.f32 %v1408_v13, %v1089_v12 }
 0x36b   : > { %1194 = vst.msk [vmem:[%s2395_s10 + $0x28] sm:$0x3] %vm1193_vm5, %v1184_v14 }
 0x36c PF: > { %s17_s17 = sadd.s32 1, %s1788_s17   ;;  %s2442_s12 = smov %s1772_s13 }
 0x36d   : > { %p14_p1 = scmp.ge.s32.totalorder %s17_s17, 4   ;;  %s2443_s13 = smov %s1776_s14 }
 0x36e   : > { %s2444_s14 = smov %s2028_s27  ;;  %s2445_s15 = smov %s1784_s16 }
 0x36f   : > { %s2446_s16 = smov %s2448_s25  ;;  %16 = sbr.rel (!%p14_p1) target bundleno = 5 (0x5), region = 81 }
 0x376   :  { %1222 = vsyncpa [#allocation5], 1 }
 0x377   :  { %1224 = vsyncpa [#allocation5 + $0x1], 1 }
 0x378   :  { %1225 = vsyncpa [#allocation7], 1 }

</bundles_post_ra>
